<compile_context>
chip_gen: v7x
topology: tpu7x:2x2x1
jax: 0.10.0
libtpu: 0.0.40
codegen_flags: <defaults>
</compile_context>

<pallas_src>
import jax
import jax.numpy as jnp
import numpy as np
from jax import lax
from jax.experimental import pallas as pl
from jax.experimental.pallas import tpu as pltpu


# ---------------------------------------------------------------------------
# Fused decoder kernel: stacked LSTM + masked bilinear attention + affine.
# ---------------------------------------------------------------------------
def _make_decoder_kernel(num_layers, T, B, H):
    f32 = jnp.float32
    bf16 = jnp.bfloat16

    def kernel(*refs):
        idx = 0
        gx0_ref = refs[idx]; idx += 1          # (T*B, 4H) f32  hoisted x@W_ih + b, row = t*B+b
        h0_ref = refs[idx]; idx += 1           # (L, B, H) f32
        c0_ref = refs[idx]; idx += 1           # (L, B, H) f32
        whh0_ref = refs[idx]; idx += 1         # (H, 4H) bf16
        upper = []
        for _ in range(num_layers - 1):        # per upper layer: wih(bf16), whh(bf16), b(f32)
            upper.append(refs[idx:idx + 3]); idx += 3
        mem_ref, mask_ref, wa_ref, wh_ref, wc_ref, baff_ref = refs[idx:idx + 6]; idx += 6
        feats_ref, hT_ref, cT_ref = refs[idx:idx + 3]; idx += 3
        xs_ref, gx_ref, q_ref, ph_ref = refs[idx:idx + 4]

        In = feats_ref.shape[-1]

        # ---------------- stacked LSTM ----------------
        for l in range(num_layers):
            if l == 0:
                src_ref = gx0_ref              # gate inputs precomputed in the wrapper
                whh = whh0_ref[...]
            else:
                wih_ref, whh_ref, b_ref = upper[l - 1]
                # Batched input projection for this layer, hoisted off the serial
                # recurrent path: ONE (T*B, H) @ (H, 4H) matmul (+ bias, broadcast once).
                gx_ref[...] = (jnp.dot(xs_ref[...].astype(bf16), wih_ref[...],
                                       preferred_element_type=f32) + b_ref[...])
                src_ref = gx_ref
                whh = whh_ref[...]             # loop-invariant weight load, hoisted

            def step(t, carry, src_ref=src_ref, whh=whh):
                h, c = carry
                row = pl.multiple_of(t * B, B)
                # Only h @ W_hh remains on the serial per-step critical path.
                gates = (src_ref[pl.ds(row, B), :]
                         + jnp.dot(h.astype(bf16), whh, preferred_element_type=f32))
                i_g = jax.nn.sigmoid(gates[:, 0 * H:1 * H])   # PyTorch gate order [i,f,g,o]
                f_g = jax.nn.sigmoid(gates[:, 1 * H:2 * H])
                g_g = jnp.tanh(gates[:, 2 * H:3 * H])
                o_g = jax.nn.sigmoid(gates[:, 3 * H:4 * H])
                c = f_g * c + i_g * g_g
                h = o_g * jnp.tanh(c)
                xs_ref[pl.ds(row, B), :] = h   # per-step output -> VMEM scratch (vst slot)
                return (h, c)

            # T=8: full unroll; for large T use unroll=2..4 to bound regalloc.
            h, c = lax.fori_loop(0, T, step, (h0_ref[l], c0_ref[l]), unroll=True)
            hT_ref[l] = h
            cT_ref[l] = c

        # ---------------- masked bilinear attention + affine ----------------
        # Batch-invariant matmuls hoisted out of the per-batch loop (MXU M dim = T*B).
        dec_all = xs_ref[...].astype(bf16)                   # final-layer outputs (T*B, H)
        q_ref[...] = jnp.dot(dec_all, wa_ref[...], preferred_element_type=f32)   # (T*B, E)
        ph_ref[...] = jnp.dot(dec_all, wh_ref[...], preferred_element_type=f32)  # (T*B, In)
        mask_all = mask_ref[...]                              # (B, S) f32, 1.0 = valid
        w_c = wc_ref[...]                                     # (E, In) bf16
        bias_T = jnp.broadcast_to(baff_ref[...], (T, In))     # hoisted broadcast

        for bb in range(B):
            mem_b = mem_ref[bb]                                        # (S, E) bf16
            q_b = q_ref[pl.ds(bb, T, stride=B), :]                     # (T, E) rows bb::B
            # q_b @ mem_b^T without materializing a transpose.
            scores = lax.dot_general(q_b.astype(bf16), mem_b, (((1,), (1,)), ((), ())),
                                     preferred_element_type=f32)       # (T, S)
            # Masking / softmax kept in f32 (underflow-based masking needs f32).
            valid = mask_all[bb:bb + 1, :] > 0.5
            scores = jnp.where(valid, scores, jnp.float32(-1e9))
            scores = scores - jnp.max(scores, axis=-1, keepdims=True)
            p = jnp.exp(scores)               # masked columns underflow to exactly 0
            # NOTE: all-masked rows (src len 0) give a garbage row; same class of issue
            # as the pure-JAX reference and not exercised by this module's usage.
            attn = p / jnp.sum(p, axis=-1, keepdims=True)              # exact divide
            ctx = jnp.dot(attn.astype(bf16), mem_b, preferred_element_type=f32)  # (T, E)
            # cat([out, ctx]) @ W_aff == out @ W_aff[:H] + ctx @ W_aff[H:]
            feats_ref[bb] = (ph_ref[pl.ds(bb, T, stride=B), :]
                             + jnp.dot(ctx.astype(bf16), w_c, preferred_element_type=f32)
                             + bias_T)

    return kernel


# ---------------------------------------------------------------------------
# Module wrapper (parameter setup + hoisted layer-0 input projection in XLA)
# ---------------------------------------------------------------------------
def init_params(key, input_size, hidden_size, num_layers, enc_dim):
    scale = 0.1
    params = {'lstm': []}
    for l in range(num_layers):
        din = input_size if l == 0 else hidden_size
        key, k1, k2, k3 = jax.random.split(key, 4)
        wih = scale * jax.random.normal(k1, (din, 4 * hidden_size), jnp.float32)
        whh = scale * jax.random.normal(k2, (hidden_size, 4 * hidden_size), jnp.float32)
        b = scale * jax.random.normal(k3, (1, 4 * hidden_size), jnp.float32)  # b_ih+b_hh folded
        params['lstm'].append((wih, whh, b))
    key, k1, k2, k3 = jax.random.split(key, 4)
    params['wa'] = scale * jax.random.normal(k1, (hidden_size, enc_dim), jnp.float32)
    params['waff'] = scale * jax.random.normal(
        k2, (hidden_size + enc_dim, input_size), jnp.float32)
    params['baff'] = scale * jax.random.normal(k3, (1, input_size), jnp.float32)
    return params


def rnn_decoder_forward(x, hidden_states, memory, src_mask, params):
    h0, c0 = hidden_states                    # each (num_layers, B, H)
    B, T, _ = x.shape
    H = h0.shape[-1]
    E = memory.shape[-1]
    L = len(params['lstm'])
    In = params['waff'].shape[-1]
    bf16 = jnp.bfloat16

    wih0, whh0, b0 = params['lstm'][0]
    # Hoisted layer-0 input projection: one big XLA matmul (off the in-kernel serial
    # path), flattened time-major so row = t*B + b matches the kernel scratch layout.
    # (Kept f32 here; can be cast to bf16 for large shapes on v6e/v7x.)
    gx0 = (jnp.einsum('btd,dg->tbg', x, wih0) + b0[0]).reshape(T * B, 4 * H)

    # Pre-cast MXU operands to bf16 (f32 accumulation inside the kernel).
    waff = params['waff']
    w_h = waff[:H, :].astype(bf16)            # (H, In)
    w_c = waff[H:, :].astype(bf16)            # (E, In)
    wa = params['wa'].astype(bf16)            # (H, E)
    mem_bf = memory.astype(bf16)              # (B, S, E)
    whh0_bf = whh0.astype(bf16)

    upper_params = []
    for (wih, whh, b) in params['lstm'][1:]:
        upper_params += [wih.astype(bf16), whh.astype(bf16), b]

    kernel = _make_decoder_kernel(L, T, B, H)
    feats, hT, cT = pl.pallas_call(
        kernel,
        out_shape=(jax.ShapeDtypeStruct((B, T, In), jnp.float32),
                   jax.ShapeDtypeStruct((L, B, H), jnp.float32),
                   jax.ShapeDtypeStruct((L, B, H), jnp.float32)),
        scratch_shapes=[
            pltpu.VMEM((T * B, H), jnp.float32),        # per-step layer outputs, time-major
            pltpu.VMEM((T * B, 4 * H), jnp.float32),    # batched upper-layer gate inputs
            pltpu.VMEM((T * B, E), jnp.float32),        # dec @ W_a (hoisted over batch)
            pltpu.VMEM((T * B, In), jnp.float32),       # dec @ W_aff[:H] (hoisted over batch)
        ],
        # Whole problem is a few KiB: single invocation, everything VMEM-resident.
        # TODO(synk): for v7x (64 MiB VMEM) at large H, stream gx0 / bf16 the weights.
        compiler_params=pltpu.CompilerParams(vmem_limit_bytes=32 * 1024 * 1024),
    )(gx0, h0, c0, whh0_bf, *upper_params, mem_bf, src_mask,
      wa, w_h, w_c, params['baff'])
    # TODO(synk): nn.Dropout / LSTM inter-layer dropout are identity in eval mode; omitted.
    return feats, (hT, cT)


# ---------------------------------------------------------------------------
# Pure-JAX reference for correctness checking
# ---------------------------------------------------------------------------
def _lstm_layer_ref(x, h0, c0, wih, whh, b):
    H = h0.shape[-1]

    def step(carry, x_t):
        h, c = carry
        gates = x_t @ wih + h @ whh + b[0]
        i = jax.nn.sigmoid(gates[:, :H])
        f = jax.nn.sigmoid(gates[:, H:2 * H])
        g = jnp.tanh(gates[:, 2 * H:3 * H])
        o = jax.nn.sigmoid(gates[:, 3 * H:])
        c = f * c + i * g
        h = o * jnp.tanh(c)
        return (h, c), h

    (hT, cT), out_tm = lax.scan(step, (h0, c0), jnp.transpose(x, (1, 0, 2)))
    return jnp.transpose(out_tm, (1, 0, 2)), hT, cT


def forward_ref(x, hidden_states, memory, src_mask, params):
    h0, c0 = hidden_states
    out = x
    hTs, cTs = [], []
    for l, (wih, whh, b) in enumerate(params['lstm']):
        out, hT, cT = _lstm_layer_ref(out, h0[l], c0[l], wih, whh, b)
        hTs.append(hT)
        cTs.append(cT)
    q = jnp.einsum('bth,he->bte', out, params['wa'])
    scores = jnp.einsum('bte,bse->bts', q, memory)
    valid = src_mask[:, None, :] > 0.5
    scores = jnp.where(valid, scores, -1e9)
    scores = scores - scores.max(-1, keepdims=True)
    p = jnp.exp(scores) * valid.astype(jnp.float32)
    attn = p / p.sum(-1, keepdims=True)
    ctx = jnp.einsum('bts,bse->bte', attn, memory)
    feats = jnp.concatenate([out, ctx], -1) @ params['waff'] + params['baff'][0]
    return feats, (jnp.stack(hTs), jnp.stack(cTs))


if __name__ == "__main__":
    B, T, S = 2, 8, 8
    input_size, hidden_size, num_layers = 32, 32, 2
    enc_dim = 2 * hidden_size   # bidirectional encoder => hidden_size * 2

    key = jax.random.PRNGKey(0)
    key, kx, km, kh, kc = jax.random.split(key, 5)
    x = jax.random.normal(kx, (B, T, input_size), jnp.float32)
    memory = jax.random.normal(km, (B, S, enc_dim), jnp.float32)
    h0 = 0.1 * jax.random.normal(kh, (num_layers, B, hidden_size), jnp.float32)
    c0 = 0.1 * jax.random.normal(kc, (num_layers, B, hidden_size), jnp.float32)
    lens = jnp.array([S, S - 3], dtype=jnp.int32)
    src_mask = (jnp.arange(S)[None, :] < lens[:, None]).astype(jnp.float32)

    params = init_params(jax.random.PRNGKey(42), input_size, hidden_size,
                         num_layers, enc_dim)

    feats, (hT, cT) = rnn_decoder_forward(x, (h0, c0), memory, src_mask, params)
    feats = jax.block_until_ready(feats)

    # shape checks + numerical check against pure-JAX (f32) reference
    assert feats.shape == (B, T, input_size)
    assert hT.shape == (num_layers, B, hidden_size)
    assert cT.shape == (num_layers, B, hidden_size)
    feats_ref, (hT_ref, cT_ref) = forward_ref(x, (h0, c0), memory, src_mask, params)
    ok = (np.allclose(np.asarray(feats), np.asarray(feats_ref), atol=3e-2, rtol=3e-2)
          and np.allclose(np.asarray(hT), np.asarray(hT_ref), atol=3e-2, rtol=3e-2)
          and np.allclose(np.asarray(cT), np.asarray(cT_ref), atol=3e-2, rtol=3e-2))
    if not ok:
        raise AssertionError("Pallas result does not match JAX reference")

    print("KERNEL_OK")
</pallas_src>

<mosaic_0001>
module attributes {stable_mosaic.version = 11 : i64} {
  func.func @kernel(%arg0: memref<16x128xf32, #tpu.memory_space<vmem>>, %arg1: memref<2x2x32xf32, #tpu.memory_space<vmem>>, %arg2: memref<2x2x32xf32, #tpu.memory_space<vmem>>, %arg3: memref<32x128xbf16, #tpu.memory_space<vmem>>, %arg4: memref<32x128xbf16, #tpu.memory_space<vmem>>, %arg5: memref<32x128xbf16, #tpu.memory_space<vmem>>, %arg6: memref<1x128xf32, #tpu.memory_space<vmem>>, %arg7: memref<2x8x64xbf16, #tpu.memory_space<vmem>>, %arg8: memref<2x8xf32, #tpu.memory_space<vmem>>, %arg9: memref<32x64xbf16, #tpu.memory_space<vmem>>, %arg10: memref<32x32xbf16, #tpu.memory_space<vmem>>, %arg11: memref<64x32xbf16, #tpu.memory_space<vmem>>, %arg12: memref<1x32xf32, #tpu.memory_space<vmem>>, %arg13: memref<2x8x32xf32, #tpu.memory_space<vmem>>, %arg14: memref<2x2x32xf32, #tpu.memory_space<vmem>>, %arg15: memref<2x2x32xf32, #tpu.memory_space<vmem>>, %arg16: memref<16x32xf32, #tpu.memory_space<vmem>>, %arg17: memref<16x128xf32, #tpu.memory_space<vmem>>, %arg18: memref<16x64xf32, #tpu.memory_space<vmem>>, %arg19: memref<16x32xf32, #tpu.memory_space<vmem>>) attributes {dimension_semantics = [], scalar_prefetch = 0 : i64, scratch_operands = 4 : i64, tpu.core_type = #tpu.core_type<tc>} {
    %c0 = arith.constant 0 : index
    %c0_0 = arith.constant 0 : index
    %0 = vector.load %arg3[%c0, %c0_0] : memref<32x128xbf16, #tpu.memory_space<vmem>>, vector<32x128xbf16>
    %c0_1 = arith.constant 0 : index
    %c0_2 = arith.constant 0 : index
    %c0_3 = arith.constant 0 : index
    %1 = vector.load %arg1[%c0_1, %c0_2, %c0_3] : memref<2x2x32xf32, #tpu.memory_space<vmem>>, vector<1x2x32xf32>
    %2 = vector.shape_cast %1 : vector<1x2x32xf32> to vector<2x32xf32>
    %c0_4 = arith.constant 0 : index
    %c0_5 = arith.constant 0 : index
    %c0_6 = arith.constant 0 : index
    %3 = vector.load %arg2[%c0_4, %c0_5, %c0_6] : memref<2x2x32xf32, #tpu.memory_space<vmem>>, vector<1x2x32xf32>
    %4 = vector.shape_cast %3 : vector<1x2x32xf32> to vector<2x32xf32>
    %c0_i32 = arith.constant 0 : i32
    %c2_i32 = arith.constant 2 : i32
    %5 = arith.muli %c0_i32, %c2_i32 : i32
    %6 = tpu.assume_multiple %5, 2 : i32
    %7 = arith.index_cast %6 : i32 to index
    %c0_7 = arith.constant 0 : index
    %8 = vector.load %arg0[%7, %c0_7] : memref<16x128xf32, #tpu.memory_space<vmem>>, vector<2x128xf32>
    %9 = arith.truncf %2 : vector<2x32xf32> to vector<2x32xbf16>
    %cst = arith.constant dense<0.000000e+00> : vector<2x128xf32>
    %10 = tpu.matmul %9, %0, %cst {dimension_numbers = #tpu.dot_dimension_numbers<[1], [0], [0], [1], [0, 0, 1, 1], [], []>} : vector<2x32xbf16>, vector<32x128xbf16>, vector<2x128xf32> -> vector<2x128xf32>
    %11 = arith.addf %8, %10 : vector<2x128xf32>
    %12 = vector.extract_strided_slice %11 {offsets = [0, 0], sizes = [2, 32], strides = [1, 1]} : vector<2x128xf32> to vector<2x32xf32>
    %13 = arith.negf %12 : vector<2x32xf32>
    %14 = math.exp %13 : vector<2x32xf32>
    %cst_8 = arith.constant 1.000000e+00 : f32
    %15 = vector.broadcast %cst_8 : f32 to vector<2x32xf32>
    %16 = arith.addf %15, %14 : vector<2x32xf32>
    %17 = arith.divf %15, %16 : vector<2x32xf32>
    %18 = vector.extract_strided_slice %11 {offsets = [0, 32], sizes = [2, 32], strides = [1, 1]} : vector<2x128xf32> to vector<2x32xf32>
    %19 = arith.negf %18 : vector<2x32xf32>
    %20 = math.exp %19 : vector<2x32xf32>
    %cst_9 = arith.constant 1.000000e+00 : f32
    %21 = vector.broadcast %cst_9 : f32 to vector<2x32xf32>
    %22 = arith.addf %21, %20 : vector<2x32xf32>
    %23 = arith.divf %21, %22 : vector<2x32xf32>
    %24 = vector.extract_strided_slice %11 {offsets = [0, 64], sizes = [2, 32], strides = [1, 1]} : vector<2x128xf32> to vector<2x32xf32>
    %25 = math.tanh %24 : vector<2x32xf32>
    %26 = vector.extract_strided_slice %11 {offsets = [0, 96], sizes = [2, 32], strides = [1, 1]} : vector<2x128xf32> to vector<2x32xf32>
    %27 = arith.negf %26 : vector<2x32xf32>
    %28 = math.exp %27 : vector<2x32xf32>
    %cst_10 = arith.constant 1.000000e+00 : f32
    %29 = vector.broadcast %cst_10 : f32 to vector<2x32xf32>
    %30 = arith.addf %29, %28 : vector<2x32xf32>
    %31 = arith.divf %29, %30 : vector<2x32xf32>
    %32 = arith.mulf %23, %4 : vector<2x32xf32>
    %33 = arith.mulf %17, %25 : vector<2x32xf32>
    %34 = arith.addf %32, %33 : vector<2x32xf32>
    %35 = math.tanh %34 : vector<2x32xf32>
    %36 = arith.mulf %31, %35 : vector<2x32xf32>
    %37 = arith.index_cast %6 : i32 to index
    %c0_11 = arith.constant 0 : index
    %38 = vector.load %arg16[%37, %c0_11] : memref<16x32xf32, #tpu.memory_space<vmem>>, vector<2x32xf32>
    tpu.vector_store %arg16[%37, %c0_11], %36 {strides = array<i32>} : memref<16x32xf32, #tpu.memory_space<vmem>>, vector<2x32xf32>,
    %c1_i32 = arith.constant 1 : i32
    %c2_i32_12 = arith.constant 2 : i32
    %39 = arith.muli %c1_i32, %c2_i32_12 : i32
    %40 = tpu.assume_multiple %39, 2 : i32
    %41 = arith.index_cast %40 : i32 to index
    %c0_13 = arith.constant 0 : index
    %42 = vector.load %arg0[%41, %c0_13] : memref<16x128xf32, #tpu.memory_space<vmem>>, vector<2x128xf32>
    %43 = arith.truncf %36 : vector<2x32xf32> to vector<2x32xbf16>
    %cst_14 = arith.constant dense<0.000000e+00> : vector<2x128xf32>
    %44 = tpu.matmul %43, %0, %cst_14 {dimension_numbers = #tpu.dot_dimension_numbers<[1], [0], [0], [1], [0, 0, 1, 1], [], []>} : vector<2x32xbf16>, vector<32x128xbf16>, vector<2x128xf32> -> vector<2x128xf32>
    %45 = arith.addf %42, %44 : vector<2x128xf32>
    %46 = vector.extract_strided_slice %45 {offsets = [0, 0], sizes = [2, 32], strides = [1, 1]} : vector<2x128xf32> to vector<2x32xf32>
    %47 = arith.negf %46 : vector<2x32xf32>
    %48 = math.exp %47 : vector<2x32xf32>
    %cst_15 = arith.constant 1.000000e+00 : f32
    %49 = vector.broadcast %cst_15 : f32 to vector<2x32xf32>
    %50 = arith.addf %49, %48 : vector<2x32xf32>
    %51 = arith.divf %49, %50 : vector<2x32xf32>
    %52 = vector.extract_strided_slice %45 {offsets = [0, 32], sizes = [2, 32], strides = [1, 1]} : vector<2x128xf32> to vector<2x32xf32>
    %53 = arith.negf %52 : vector<2x32xf32>
    %54 = math.exp %53 : vector<2x32xf32>
    %cst_16 = arith.constant 1.000000e+00 : f32
    %55 = vector.broadcast %cst_16 : f32 to vector<2x32xf32>
    %56 = arith.addf %55, %54 : vector<2x32xf32>
    %57 = arith.divf %55, %56 : vector<2x32xf32>
    %58 = vector.extract_strided_slice %45 {offsets = [0, 64], sizes = [2, 32], strides = [1, 1]} : vector<2x128xf32> to vector<2x32xf32>
    %59 = math.tanh %58 : vector<2x32xf32>
    %60 = vector.extract_strided_slice %45 {offsets = [0, 96], sizes = [2, 32], strides = [1, 1]} : vector<2x128xf32> to vector<2x32xf32>
    %61 = arith.negf %60 : vector<2x32xf32>
    %62 = math.exp %61 : vector<2x32xf32>
    %cst_17 = arith.constant 1.000000e+00 : f32
    %63 = vector.broadcast %cst_17 : f32 to vector<2x32xf32>
    %64 = arith.addf %63, %62 : vector<2x32xf32>
    %65 = arith.divf %63, %64 : vector<2x32xf32>
    %66 = arith.mulf %57, %34 : vector<2x32xf32>
    %67 = arith.mulf %51, %59 : vector<2x32xf32>
    %68 = arith.addf %66, %67 : vector<2x32xf32>
    %69 = math.tanh %68 : vector<2x32xf32>
    %70 = arith.mulf %65, %69 : vector<2x32xf32>
    %71 = arith.index_cast %40 : i32 to index
    %c0_18 = arith.constant 0 : index
    %72 = vector.load %arg16[%71, %c0_18] : memref<16x32xf32, #tpu.memory_space<vmem>>, vector<2x32xf32>
    tpu.vector_store %arg16[%71, %c0_18], %70 {strides = array<i32>} : memref<16x32xf32, #tpu.memory_space<vmem>>, vector<2x32xf32>,
    %c2_i32_19 = arith.constant 2 : i32
    %c2_i32_20 = arith.constant 2 : i32
    %73 = arith.muli %c2_i32_19, %c2_i32_20 : i32
    %74 = tpu.assume_multiple %73, 2 : i32
    %75 = arith.index_cast %74 : i32 to index
    %c0_21 = arith.constant 0 : index
    %76 = vector.load %arg0[%75, %c0_21] : memref<16x128xf32, #tpu.memory_space<vmem>>, vector<2x128xf32>
    %77 = arith.truncf %70 : vector<2x32xf32> to vector<2x32xbf16>
    %cst_22 = arith.constant dense<0.000000e+00> : vector<2x128xf32>
    %78 = tpu.matmul %77, %0, %cst_22 {dimension_numbers = #tpu.dot_dimension_numbers<[1], [0], [0], [1], [0, 0, 1, 1], [], []>} : vector<2x32xbf16>, vector<32x128xbf16>, vector<2x128xf32> -> vector<2x128xf32>
    %79 = arith.addf %76, %78 : vector<2x128xf32>
    %80 = vector.extract_strided_slice %79 {offsets = [0, 0], sizes = [2, 32], strides = [1, 1]} : vector<2x128xf32> to vector<2x32xf32>
    %81 = arith.negf %80 : vector<2x32xf32>
    %82 = math.exp %81 : vector<2x32xf32>
    %cst_23 = arith.constant 1.000000e+00 : f32
    %83 = vector.broadcast %cst_23 : f32 to vector<2x32xf32>
    %84 = arith.addf %83, %82 : vector<2x32xf32>
    %85 = arith.divf %83, %84 : vector<2x32xf32>
    %86 = vector.extract_strided_slice %79 {offsets = [0, 32], sizes = [2, 32], strides = [1, 1]} : vector<2x128xf32> to vector<2x32xf32>
    %87 = arith.negf %86 : vector<2x32xf32>
    %88 = math.exp %87 : vector<2x32xf32>
    %cst_24 = arith.constant 1.000000e+00 : f32
    %89 = vector.broadcast %cst_24 : f32 to vector<2x32xf32>
    %90 = arith.addf %89, %88 : vector<2x32xf32>
    %91 = arith.divf %89, %90 : vector<2x32xf32>
    %92 = vector.extract_strided_slice %79 {offsets = [0, 64], sizes = [2, 32], strides = [1, 1]} : vector<2x128xf32> to vector<2x32xf32>
    %93 = math.tanh %92 : vector<2x32xf32>
    %94 = vector.extract_strided_slice %79 {offsets = [0, 96], sizes = [2, 32], strides = [1, 1]} : vector<2x128xf32> to vector<2x32xf32>
    %95 = arith.negf %94 : vector<2x32xf32>
    %96 = math.exp %95 : vector<2x32xf32>
    %cst_25 = arith.constant 1.000000e+00 : f32
    %97 = vector.broadcast %cst_25 : f32 to vector<2x32xf32>
    %98 = arith.addf %97, %96 : vector<2x32xf32>
    %99 = arith.divf %97, %98 : vector<2x32xf32>
    %100 = arith.mulf %91, %68 : vector<2x32xf32>
    %101 = arith.mulf %85, %93 : vector<2x32xf32>
    %102 = arith.addf %100, %101 : vector<2x32xf32>
    %103 = math.tanh %102 : vector<2x32xf32>
    %104 = arith.mulf %99, %103 : vector<2x32xf32>
    %105 = arith.index_cast %74 : i32 to index
    %c0_26 = arith.constant 0 : index
    %106 = vector.load %arg16[%105, %c0_26] : memref<16x32xf32, #tpu.memory_space<vmem>>, vector<2x32xf32>
    tpu.vector_store %arg16[%105, %c0_26], %104 {strides = array<i32>} : memref<16x32xf32, #tpu.memory_space<vmem>>, vector<2x32xf32>,
    %c3_i32 = arith.constant 3 : i32
    %c2_i32_27 = arith.constant 2 : i32
    %107 = arith.muli %c3_i32, %c2_i32_27 : i32
    %108 = tpu.assume_multiple %107, 2 : i32
    %109 = arith.index_cast %108 : i32 to index
    %c0_28 = arith.constant 0 : index
    %110 = vector.load %arg0[%109, %c0_28] : memref<16x128xf32, #tpu.memory_space<vmem>>, vector<2x128xf32>
    %111 = arith.truncf %104 : vector<2x32xf32> to vector<2x32xbf16>
    %cst_29 = arith.constant dense<0.000000e+00> : vector<2x128xf32>
    %112 = tpu.matmul %111, %0, %cst_29 {dimension_numbers = #tpu.dot_dimension_numbers<[1], [0], [0], [1], [0, 0, 1, 1], [], []>} : vector<2x32xbf16>, vector<32x128xbf16>, vector<2x128xf32> -> vector<2x128xf32>
    %113 = arith.addf %110, %112 : vector<2x128xf32>
    %114 = vector.extract_strided_slice %113 {offsets = [0, 0], sizes = [2, 32], strides = [1, 1]} : vector<2x128xf32> to vector<2x32xf32>
    %115 = arith.negf %114 : vector<2x32xf32>
    %116 = math.exp %115 : vector<2x32xf32>
    %cst_30 = arith.constant 1.000000e+00 : f32
    %117 = vector.broadcast %cst_30 : f32 to vector<2x32xf32>
    %118 = arith.addf %117, %116 : vector<2x32xf32>
    %119 = arith.divf %117, %118 : vector<2x32xf32>
    %120 = vector.extract_strided_slice %113 {offsets = [0, 32], sizes = [2, 32], strides = [1, 1]} : vector<2x128xf32> to vector<2x32xf32>
    %121 = arith.negf %120 : vector<2x32xf32>
    %122 = math.exp %121 : vector<2x32xf32>
    %cst_31 = arith.constant 1.000000e+00 : f32
    %123 = vector.broadcast %cst_31 : f32 to vector<2x32xf32>
    %124 = arith.addf %123, %122 : vector<2x32xf32>
    %125 = arith.divf %123, %124 : vector<2x32xf32>
    %126 = vector.extract_strided_slice %113 {offsets = [0, 64], sizes = [2, 32], strides = [1, 1]} : vector<2x128xf32> to vector<2x32xf32>
    %127 = math.tanh %126 : vector<2x32xf32>
    %128 = vector.extract_strided_slice %113 {offsets = [0, 96], sizes = [2, 32], strides = [1, 1]} : vector<2x128xf32> to vector<2x32xf32>
    %129 = arith.negf %128 : vector<2x32xf32>
    %130 = math.exp %129 : vector<2x32xf32>
    %cst_32 = arith.constant 1.000000e+00 : f32
    %131 = vector.broadcast %cst_32 : f32 to vector<2x32xf32>
    %132 = arith.addf %131, %130 : vector<2x32xf32>
    %133 = arith.divf %131, %132 : vector<2x32xf32>
    %134 = arith.mulf %125, %102 : vector<2x32xf32>
    %135 = arith.mulf %119, %127 : vector<2x32xf32>
    %136 = arith.addf %134, %135 : vector<2x32xf32>
    %137 = math.tanh %136 : vector<2x32xf32>
    %138 = arith.mulf %133, %137 : vector<2x32xf32>
    %139 = arith.index_cast %108 : i32 to index
    %c0_33 = arith.constant 0 : index
    %140 = vector.load %arg16[%139, %c0_33] : memref<16x32xf32, #tpu.memory_space<vmem>>, vector<2x32xf32>
    tpu.vector_store %arg16[%139, %c0_33], %138 {strides = array<i32>} : memref<16x32xf32, #tpu.memory_space<vmem>>, vector<2x32xf32>,
    %c4_i32 = arith.constant 4 : i32
    %c2_i32_34 = arith.constant 2 : i32
    %141 = arith.muli %c4_i32, %c2_i32_34 : i32
    %142 = tpu.assume_multiple %141, 2 : i32
    %143 = arith.index_cast %142 : i32 to index
    %c0_35 = arith.constant 0 : index
    %144 = vector.load %arg0[%143, %c0_35] : memref<16x128xf32, #tpu.memory_space<vmem>>, vector<2x128xf32>
    %145 = arith.truncf %138 : vector<2x32xf32> to vector<2x32xbf16>
    %cst_36 = arith.constant dense<0.000000e+00> : vector<2x128xf32>
    %146 = tpu.matmul %145, %0, %cst_36 {dimension_numbers = #tpu.dot_dimension_numbers<[1], [0], [0], [1], [0, 0, 1, 1], [], []>} : vector<2x32xbf16>, vector<32x128xbf16>, vector<2x128xf32> -> vector<2x128xf32>
    %147 = arith.addf %144, %146 : vector<2x128xf32>
    %148 = vector.extract_strided_slice %147 {offsets = [0, 0], sizes = [2, 32], strides = [1, 1]} : vector<2x128xf32> to vector<2x32xf32>
    %149 = arith.negf %148 : vector<2x32xf32>
    %150 = math.exp %149 : vector<2x32xf32>
    %cst_37 = arith.constant 1.000000e+00 : f32
    %151 = vector.broadcast %cst_37 : f32 to vector<2x32xf32>
    %152 = arith.addf %151, %150 : vector<2x32xf32>
    %153 = arith.divf %151, %152 : vector<2x32xf32>
    %154 = vector.extract_strided_slice %147 {offsets = [0, 32], sizes = [2, 32], strides = [1, 1]} : vector<2x128xf32> to vector<2x32xf32>
    %155 = arith.negf %154 : vector<2x32xf32>
    %156 = math.exp %155 : vector<2x32xf32>
    %cst_38 = arith.constant 1.000000e+00 : f32
    %157 = vector.broadcast %cst_38 : f32 to vector<2x32xf32>
    %158 = arith.addf %157, %156 : vector<2x32xf32>
    %159 = arith.divf %157, %158 : vector<2x32xf32>
    %160 = vector.extract_strided_slice %147 {offsets = [0, 64], sizes = [2, 32], strides = [1, 1]} : vector<2x128xf32> to vector<2x32xf32>
    %161 = math.tanh %160 : vector<2x32xf32>
    %162 = vector.extract_strided_slice %147 {offsets = [0, 96], sizes = [2, 32], strides = [1, 1]} : vector<2x128xf32> to vector<2x32xf32>
    %163 = arith.negf %162 : vector<2x32xf32>
    %164 = math.exp %163 : vector<2x32xf32>
    %cst_39 = arith.constant 1.000000e+00 : f32
    %165 = vector.broadcast %cst_39 : f32 to vector<2x32xf32>
    %166 = arith.addf %165, %164 : vector<2x32xf32>
    %167 = arith.divf %165, %166 : vector<2x32xf32>
    %168 = arith.mulf %159, %136 : vector<2x32xf32>
    %169 = arith.mulf %153, %161 : vector<2x32xf32>
    %170 = arith.addf %168, %169 : vector<2x32xf32>
    %171 = math.tanh %170 : vector<2x32xf32>
    %172 = arith.mulf %167, %171 : vector<2x32xf32>
    %173 = arith.index_cast %142 : i32 to index
    %c0_40 = arith.constant 0 : index
    %174 = vector.load %arg16[%173, %c0_40] : memref<16x32xf32, #tpu.memory_space<vmem>>, vector<2x32xf32>
    tpu.vector_store %arg16[%173, %c0_40], %172 {strides = array<i32>} : memref<16x32xf32, #tpu.memory_space<vmem>>, vector<2x32xf32>,
    %c5_i32 = arith.constant 5 : i32
    %c2_i32_41 = arith.constant 2 : i32
    %175 = arith.muli %c5_i32, %c2_i32_41 : i32
    %176 = tpu.assume_multiple %175, 2 : i32
    %177 = arith.index_cast %176 : i32 to index
    %c0_42 = arith.constant 0 : index
    %178 = vector.load %arg0[%177, %c0_42] : memref<16x128xf32, #tpu.memory_space<vmem>>, vector<2x128xf32>
    %179 = arith.truncf %172 : vector<2x32xf32> to vector<2x32xbf16>
    %cst_43 = arith.constant dense<0.000000e+00> : vector<2x128xf32>
    %180 = tpu.matmul %179, %0, %cst_43 {dimension_numbers = #tpu.dot_dimension_numbers<[1], [0], [0], [1], [0, 0, 1, 1], [], []>} : vector<2x32xbf16>, vector<32x128xbf16>, vector<2x128xf32> -> vector<2x128xf32>
    %181 = arith.addf %178, %180 : vector<2x128xf32>
    %182 = vector.extract_strided_slice %181 {offsets = [0, 0], sizes = [2, 32], strides = [1, 1]} : vector<2x128xf32> to vector<2x32xf32>
    %183 = arith.negf %182 : vector<2x32xf32>
    %184 = math.exp %183 : vector<2x32xf32>
    %cst_44 = arith.constant 1.000000e+00 : f32
    %185 = vector.broadcast %cst_44 : f32 to vector<2x32xf32>
    %186 = arith.addf %185, %184 : vector<2x32xf32>
    %187 = arith.divf %185, %186 : vector<2x32xf32>
    %188 = vector.extract_strided_slice %181 {offsets = [0, 32], sizes = [2, 32], strides = [1, 1]} : vector<2x128xf32> to vector<2x32xf32>
    %189 = arith.negf %188 : vector<2x32xf32>
    %190 = math.exp %189 : vector<2x32xf32>
    %cst_45 = arith.constant 1.000000e+00 : f32
    %191 = vector.broadcast %cst_45 : f32 to vector<2x32xf32>
    %192 = arith.addf %191, %190 : vector<2x32xf32>
    %193 = arith.divf %191, %192 : vector<2x32xf32>
    %194 = vector.extract_strided_slice %181 {offsets = [0, 64], sizes = [2, 32], strides = [1, 1]} : vector<2x128xf32> to vector<2x32xf32>
    %195 = math.tanh %194 : vector<2x32xf32>
    %196 = vector.extract_strided_slice %181 {offsets = [0, 96], sizes = [2, 32], strides = [1, 1]} : vector<2x128xf32> to vector<2x32xf32>
    %197 = arith.negf %196 : vector<2x32xf32>
    %198 = math.exp %197 : vector<2x32xf32>
    %cst_46 = arith.constant 1.000000e+00 : f32
    %199 = vector.broadcast %cst_46 : f32 to vector<2x32xf32>
    %200 = arith.addf %199, %198 : vector<2x32xf32>
    %201 = arith.divf %199, %200 : vector<2x32xf32>
    %202 = arith.mulf %193, %170 : vector<2x32xf32>
    %203 = arith.mulf %187, %195 : vector<2x32xf32>
    %204 = arith.addf %202, %203 : vector<2x32xf32>
    %205 = math.tanh %204 : vector<2x32xf32>
    %206 = arith.mulf %201, %205 : vector<2x32xf32>
    %207 = arith.index_cast %176 : i32 to index
    %c0_47 = arith.constant 0 : index
    %208 = vector.load %arg16[%207, %c0_47] : memref<16x32xf32, #tpu.memory_space<vmem>>, vector<2x32xf32>
    tpu.vector_store %arg16[%207, %c0_47], %206 {strides = array<i32>} : memref<16x32xf32, #tpu.memory_space<vmem>>, vector<2x32xf32>,
    %c6_i32 = arith.constant 6 : i32
    %c2_i32_48 = arith.constant 2 : i32
    %209 = arith.muli %c6_i32, %c2_i32_48 : i32
    %210 = tpu.assume_multiple %209, 2 : i32
    %211 = arith.index_cast %210 : i32 to index
    %c0_49 = arith.constant 0 : index
    %212 = vector.load %arg0[%211, %c0_49] : memref<16x128xf32, #tpu.memory_space<vmem>>, vector<2x128xf32>
    %213 = arith.truncf %206 : vector<2x32xf32> to vector<2x32xbf16>
    %cst_50 = arith.constant dense<0.000000e+00> : vector<2x128xf32>
    %214 = tpu.matmul %213, %0, %cst_50 {dimension_numbers = #tpu.dot_dimension_numbers<[1], [0], [0], [1], [0, 0, 1, 1], [], []>} : vector<2x32xbf16>, vector<32x128xbf16>, vector<2x128xf32> -> vector<2x128xf32>
    %215 = arith.addf %212, %214 : vector<2x128xf32>
    %216 = vector.extract_strided_slice %215 {offsets = [0, 0], sizes = [2, 32], strides = [1, 1]} : vector<2x128xf32> to vector<2x32xf32>
    %217 = arith.negf %216 : vector<2x32xf32>
    %218 = math.exp %217 : vector<2x32xf32>
    %cst_51 = arith.constant 1.000000e+00 : f32
    %219 = vector.broadcast %cst_51 : f32 to vector<2x32xf32>
    %220 = arith.addf %219, %218 : vector<2x32xf32>
    %221 = arith.divf %219, %220 : vector<2x32xf32>
    %222 = vector.extract_strided_slice %215 {offsets = [0, 32], sizes = [2, 32], strides = [1, 1]} : vector<2x128xf32> to vector<2x32xf32>
    %223 = arith.negf %222 : vector<2x32xf32>
    %224 = math.exp %223 : vector<2x32xf32>
    %cst_52 = arith.constant 1.000000e+00 : f32
    %225 = vector.broadcast %cst_52 : f32 to vector<2x32xf32>
    %226 = arith.addf %225, %224 : vector<2x32xf32>
    %227 = arith.divf %225, %226 : vector<2x32xf32>
    %228 = vector.extract_strided_slice %215 {offsets = [0, 64], sizes = [2, 32], strides = [1, 1]} : vector<2x128xf32> to vector<2x32xf32>
    %229 = math.tanh %228 : vector<2x32xf32>
    %230 = vector.extract_strided_slice %215 {offsets = [0, 96], sizes = [2, 32], strides = [1, 1]} : vector<2x128xf32> to vector<2x32xf32>
    %231 = arith.negf %230 : vector<2x32xf32>
    %232 = math.exp %231 : vector<2x32xf32>
    %cst_53 = arith.constant 1.000000e+00 : f32
    %233 = vector.broadcast %cst_53 : f32 to vector<2x32xf32>
    %234 = arith.addf %233, %232 : vector<2x32xf32>
    %235 = arith.divf %233, %234 : vector<2x32xf32>
    %236 = arith.mulf %227, %204 : vector<2x32xf32>
    %237 = arith.mulf %221, %229 : vector<2x32xf32>
    %238 = arith.addf %236, %237 : vector<2x32xf32>
    %239 = math.tanh %238 : vector<2x32xf32>
    %240 = arith.mulf %235, %239 : vector<2x32xf32>
    %241 = arith.index_cast %210 : i32 to index
    %c0_54 = arith.constant 0 : index
    %242 = vector.load %arg16[%241, %c0_54] : memref<16x32xf32, #tpu.memory_space<vmem>>, vector<2x32xf32>
    tpu.vector_store %arg16[%241, %c0_54], %240 {strides = array<i32>} : memref<16x32xf32, #tpu.memory_space<vmem>>, vector<2x32xf32>,
    %c7_i32 = arith.constant 7 : i32
    %c2_i32_55 = arith.constant 2 : i32
    %243 = arith.muli %c7_i32, %c2_i32_55 : i32
    %244 = tpu.assume_multiple %243, 2 : i32
    %245 = arith.index_cast %244 : i32 to index
    %c0_56 = arith.constant 0 : index
    %246 = vector.load %arg0[%245, %c0_56] : memref<16x128xf32, #tpu.memory_space<vmem>>, vector<2x128xf32>
    %247 = arith.truncf %240 : vector<2x32xf32> to vector<2x32xbf16>
    %cst_57 = arith.constant dense<0.000000e+00> : vector<2x128xf32>
    %248 = tpu.matmul %247, %0, %cst_57 {dimension_numbers = #tpu.dot_dimension_numbers<[1], [0], [0], [1], [0, 0, 1, 1], [], []>} : vector<2x32xbf16>, vector<32x128xbf16>, vector<2x128xf32> -> vector<2x128xf32>
    %249 = arith.addf %246, %248 : vector<2x128xf32>
    %250 = vector.extract_strided_slice %249 {offsets = [0, 0], sizes = [2, 32], strides = [1, 1]} : vector<2x128xf32> to vector<2x32xf32>
    %251 = arith.negf %250 : vector<2x32xf32>
    %252 = math.exp %251 : vector<2x32xf32>
    %cst_58 = arith.constant 1.000000e+00 : f32
    %253 = vector.broadcast %cst_58 : f32 to vector<2x32xf32>
    %254 = arith.addf %253, %252 : vector<2x32xf32>
    %255 = arith.divf %253, %254 : vector<2x32xf32>
    %256 = vector.extract_strided_slice %249 {offsets = [0, 32], sizes = [2, 32], strides = [1, 1]} : vector<2x128xf32> to vector<2x32xf32>
    %257 = arith.negf %256 : vector<2x32xf32>
    %258 = math.exp %257 : vector<2x32xf32>
    %cst_59 = arith.constant 1.000000e+00 : f32
    %259 = vector.broadcast %cst_59 : f32 to vector<2x32xf32>
    %260 = arith.addf %259, %258 : vector<2x32xf32>
    %261 = arith.divf %259, %260 : vector<2x32xf32>
    %262 = vector.extract_strided_slice %249 {offsets = [0, 64], sizes = [2, 32], strides = [1, 1]} : vector<2x128xf32> to vector<2x32xf32>
    %263 = math.tanh %262 : vector<2x32xf32>
    %264 = vector.extract_strided_slice %249 {offsets = [0, 96], sizes = [2, 32], strides = [1, 1]} : vector<2x128xf32> to vector<2x32xf32>
    %265 = arith.negf %264 : vector<2x32xf32>
    %266 = math.exp %265 : vector<2x32xf32>
    %cst_60 = arith.constant 1.000000e+00 : f32
    %267 = vector.broadcast %cst_60 : f32 to vector<2x32xf32>
    %268 = arith.addf %267, %266 : vector<2x32xf32>
    %269 = arith.divf %267, %268 : vector<2x32xf32>
    %270 = arith.mulf %261, %238 : vector<2x32xf32>
    %271 = arith.mulf %255, %263 : vector<2x32xf32>
    %272 = arith.addf %270, %271 : vector<2x32xf32>
    %273 = math.tanh %272 : vector<2x32xf32>
    %274 = arith.mulf %269, %273 : vector<2x32xf32>
    %275 = arith.index_cast %244 : i32 to index
    %c0_61 = arith.constant 0 : index
    %276 = vector.load %arg16[%275, %c0_61] : memref<16x32xf32, #tpu.memory_space<vmem>>, vector<2x32xf32>
    tpu.vector_store %arg16[%275, %c0_61], %274 {strides = array<i32>} : memref<16x32xf32, #tpu.memory_space<vmem>>, vector<2x32xf32>,
    %c8_i32 = arith.constant 8 : i32
    %c0_62 = arith.constant 0 : index
    %c0_63 = arith.constant 0 : index
    %c0_64 = arith.constant 0 : index
    %277 = vector.load %arg14[%c0_62, %c0_63, %c0_64] : memref<2x2x32xf32, #tpu.memory_space<vmem>>, vector<1x2x32xf32>
    %278 = vector.shape_cast %277 : vector<1x2x32xf32> to vector<2x32xf32>
    %279 = vector.shape_cast %274 : vector<2x32xf32> to vector<1x2x32xf32>
    tpu.vector_store %arg14[%c0_62, %c0_63, %c0_64], %279 {strides = array<i32>} : memref<2x2x32xf32, #tpu.memory_space<vmem>>, vector<1x2x32xf32>,
    %c0_65 = arith.constant 0 : index
    %c0_66 = arith.constant 0 : index
    %c0_67 = arith.constant 0 : index
    %280 = vector.load %arg15[%c0_65, %c0_66, %c0_67] : memref<2x2x32xf32, #tpu.memory_space<vmem>>, vector<1x2x32xf32>
    %281 = vector.shape_cast %280 : vector<1x2x32xf32> to vector<2x32xf32>
    %282 = vector.shape_cast %272 : vector<2x32xf32> to vector<1x2x32xf32>
    tpu.vector_store %arg15[%c0_65, %c0_66, %c0_67], %282 {strides = array<i32>} : memref<2x2x32xf32, #tpu.memory_space<vmem>>, vector<1x2x32xf32>,
    %c0_68 = arith.constant 0 : index
    %c0_69 = arith.constant 0 : index
    %283 = vector.load %arg16[%c0_68, %c0_69] : memref<16x32xf32, #tpu.memory_space<vmem>>, vector<16x32xf32>
    %284 = arith.truncf %283 : vector<16x32xf32> to vector<16x32xbf16>
    %c0_70 = arith.constant 0 : index
    %c0_71 = arith.constant 0 : index
    %285 = vector.load %arg4[%c0_70, %c0_71] : memref<32x128xbf16, #tpu.memory_space<vmem>>, vector<32x128xbf16>
    %cst_72 = arith.constant dense<0.000000e+00> : vector<16x128xf32>
    %286 = tpu.matmul %284, %285, %cst_72 {dimension_numbers = #tpu.dot_dimension_numbers<[1], [0], [0], [1], [0, 0, 1, 1], [], []>} : vector<16x32xbf16>, vector<32x128xbf16>, vector<16x128xf32> -> vector<16x128xf32>
    %c0_73 = arith.constant 0 : index
    %c0_74 = arith.constant 0 : index
    %287 = vector.load %arg6[%c0_73, %c0_74] : memref<1x128xf32, #tpu.memory_space<vmem>>, vector<1x128xf32>
    %288 = vector.broadcast %287 : vector<1x128xf32> to vector<16x128xf32>
    %289 = arith.addf %286, %288 : vector<16x128xf32>
    %c0_75 = arith.constant 0 : index
    %c0_76 = arith.constant 0 : index
    %290 = vector.load %arg17[%c0_75, %c0_76] : memref<16x128xf32, #tpu.memory_space<vmem>>, vector<16x128xf32>
    tpu.vector_store %arg17[%c0_75, %c0_76], %289 {strides = array<i32>} : memref<16x128xf32, #tpu.memory_space<vmem>>, vector<16x128xf32>,
    %c0_77 = arith.constant 0 : index
    %c0_78 = arith.constant 0 : index
    %291 = vector.load %arg5[%c0_77, %c0_78] : memref<32x128xbf16, #tpu.memory_space<vmem>>, vector<32x128xbf16>
    %c1 = arith.constant 1 : index
    %c0_79 = arith.constant 0 : index
    %c0_80 = arith.constant 0 : index
    %292 = vector.load %arg1[%c1, %c0_79, %c0_80] : memref<2x2x32xf32, #tpu.memory_space<vmem>>, vector<1x2x32xf32>
    %293 = vector.shape_cast %292 : vector<1x2x32xf32> to vector<2x32xf32>
    %c1_81 = arith.constant 1 : index
    %c0_82 = arith.constant 0 : index
    %c0_83 = arith.constant 0 : index
    %294 = vector.load %arg2[%c1_81, %c0_82, %c0_83] : memref<2x2x32xf32, #tpu.memory_space<vmem>>, vector<1x2x32xf32>
    %295 = vector.shape_cast %294 : vector<1x2x32xf32> to vector<2x32xf32>
    %c0_i32_84 = arith.constant 0 : i32
    %c2_i32_85 = arith.constant 2 : i32
    %296 = arith.muli %c0_i32_84, %c2_i32_85 : i32
    %297 = tpu.assume_multiple %296, 2 : i32
    %298 = arith.index_cast %297 : i32 to index
    %c0_86 = arith.constant 0 : index
    %299 = vector.load %arg17[%298, %c0_86] : memref<16x128xf32, #tpu.memory_space<vmem>>, vector<2x128xf32>
    %300 = arith.truncf %293 : vector<2x32xf32> to vector<2x32xbf16>
    %cst_87 = arith.constant dense<0.000000e+00> : vector<2x128xf32>
    %301 = tpu.matmul %300, %291, %cst_87 {dimension_numbers = #tpu.dot_dimension_numbers<[1], [0], [0], [1], [0, 0, 1, 1], [], []>} : vector<2x32xbf16>, vector<32x128xbf16>, vector<2x128xf32> -> vector<2x128xf32>
    %302 = arith.addf %299, %301 : vector<2x128xf32>
    %303 = vector.extract_strided_slice %302 {offsets = [0, 0], sizes = [2, 32], strides = [1, 1]} : vector<2x128xf32> to vector<2x32xf32>
    %304 = arith.negf %303 : vector<2x32xf32>
    %305 = math.exp %304 : vector<2x32xf32>
    %cst_88 = arith.constant 1.000000e+00 : f32
    %306 = vector.broadcast %cst_88 : f32 to vector<2x32xf32>
    %307 = arith.addf %306, %305 : vector<2x32xf32>
    %308 = arith.divf %306, %307 : vector<2x32xf32>
    %309 = vector.extract_strided_slice %302 {offsets = [0, 32], sizes = [2, 32], strides = [1, 1]} : vector<2x128xf32> to vector<2x32xf32>
    %310 = arith.negf %309 : vector<2x32xf32>
    %311 = math.exp %310 : vector<2x32xf32>
    %cst_89 = arith.constant 1.000000e+00 : f32
    %312 = vector.broadcast %cst_89 : f32 to vector<2x32xf32>
    %313 = arith.addf %312, %311 : vector<2x32xf32>
    %314 = arith.divf %312, %313 : vector<2x32xf32>
    %315 = vector.extract_strided_slice %302 {offsets = [0, 64], sizes = [2, 32], strides = [1, 1]} : vector<2x128xf32> to vector<2x32xf32>
    %316 = math.tanh %315 : vector<2x32xf32>
    %317 = vector.extract_strided_slice %302 {offsets = [0, 96], sizes = [2, 32], strides = [1, 1]} : vector<2x128xf32> to vector<2x32xf32>
    %318 = arith.negf %317 : vector<2x32xf32>
    %319 = math.exp %318 : vector<2x32xf32>
    %cst_90 = arith.constant 1.000000e+00 : f32
    %320 = vector.broadcast %cst_90 : f32 to vector<2x32xf32>
    %321 = arith.addf %320, %319 : vector<2x32xf32>
    %322 = arith.divf %320, %321 : vector<2x32xf32>
    %323 = arith.mulf %314, %295 : vector<2x32xf32>
    %324 = arith.mulf %308, %316 : vector<2x32xf32>
    %325 = arith.addf %323, %324 : vector<2x32xf32>
    %326 = math.tanh %325 : vector<2x32xf32>
    %327 = arith.mulf %322, %326 : vector<2x32xf32>
    %328 = arith.index_cast %297 : i32 to index
    %c0_91 = arith.constant 0 : index
    %329 = vector.load %arg16[%328, %c0_91] : memref<16x32xf32, #tpu.memory_space<vmem>>, vector<2x32xf32>
    tpu.vector_store %arg16[%328, %c0_91], %327 {strides = array<i32>} : memref<16x32xf32, #tpu.memory_space<vmem>>, vector<2x32xf32>,
    %c1_i32_92 = arith.constant 1 : i32
    %c2_i32_93 = arith.constant 2 : i32
    %330 = arith.muli %c1_i32_92, %c2_i32_93 : i32
    %331 = tpu.assume_multiple %330, 2 : i32
    %332 = arith.index_cast %331 : i32 to index
    %c0_94 = arith.constant 0 : index
    %333 = vector.load %arg17[%332, %c0_94] : memref<16x128xf32, #tpu.memory_space<vmem>>, vector<2x128xf32>
    %334 = arith.truncf %327 : vector<2x32xf32> to vector<2x32xbf16>
    %cst_95 = arith.constant dense<0.000000e+00> : vector<2x128xf32>
    %335 = tpu.matmul %334, %291, %cst_95 {dimension_numbers = #tpu.dot_dimension_numbers<[1], [0], [0], [1], [0, 0, 1, 1], [], []>} : vector<2x32xbf16>, vector<32x128xbf16>, vector<2x128xf32> -> vector<2x128xf32>
    %336 = arith.addf %333, %335 : vector<2x128xf32>
    %337 = vector.extract_strided_slice %336 {offsets = [0, 0], sizes = [2, 32], strides = [1, 1]} : vector<2x128xf32> to vector<2x32xf32>
    %338 = arith.negf %337 : vector<2x32xf32>
    %339 = math.exp %338 : vector<2x32xf32>
    %cst_96 = arith.constant 1.000000e+00 : f32
    %340 = vector.broadcast %cst_96 : f32 to vector<2x32xf32>
    %341 = arith.addf %340, %339 : vector<2x32xf32>
    %342 = arith.divf %340, %341 : vector<2x32xf32>
    %343 = vector.extract_strided_slice %336 {offsets = [0, 32], sizes = [2, 32], strides = [1, 1]} : vector<2x128xf32> to vector<2x32xf32>
    %344 = arith.negf %343 : vector<2x32xf32>
    %345 = math.exp %344 : vector<2x32xf32>
    %cst_97 = arith.constant 1.000000e+00 : f32
    %346 = vector.broadcast %cst_97 : f32 to vector<2x32xf32>
    %347 = arith.addf %346, %345 : vector<2x32xf32>
    %348 = arith.divf %346, %347 : vector<2x32xf32>
    %349 = vector.extract_strided_slice %336 {offsets = [0, 64], sizes = [2, 32], strides = [1, 1]} : vector<2x128xf32> to vector<2x32xf32>
    %350 = math.tanh %349 : vector<2x32xf32>
    %351 = vector.extract_strided_slice %336 {offsets = [0, 96], sizes = [2, 32], strides = [1, 1]} : vector<2x128xf32> to vector<2x32xf32>
    %352 = arith.negf %351 : vector<2x32xf32>
    %353 = math.exp %352 : vector<2x32xf32>
    %cst_98 = arith.constant 1.000000e+00 : f32
    %354 = vector.broadcast %cst_98 : f32 to vector<2x32xf32>
    %355 = arith.addf %354, %353 : vector<2x32xf32>
    %356 = arith.divf %354, %355 : vector<2x32xf32>
    %357 = arith.mulf %348, %325 : vector<2x32xf32>
    %358 = arith.mulf %342, %350 : vector<2x32xf32>
    %359 = arith.addf %357, %358 : vector<2x32xf32>
    %360 = math.tanh %359 : vector<2x32xf32>
    %361 = arith.mulf %356, %360 : vector<2x32xf32>
    %362 = arith.index_cast %331 : i32 to index
    %c0_99 = arith.constant 0 : index
    %363 = vector.load %arg16[%362, %c0_99] : memref<16x32xf32, #tpu.memory_space<vmem>>, vector<2x32xf32>
    tpu.vector_store %arg16[%362, %c0_99], %361 {strides = array<i32>} : memref<16x32xf32, #tpu.memory_space<vmem>>, vector<2x32xf32>,
    %c2_i32_100 = arith.constant 2 : i32
    %c2_i32_101 = arith.constant 2 : i32
    %364 = arith.muli %c2_i32_100, %c2_i32_101 : i32
    %365 = tpu.assume_multiple %364, 2 : i32
    %366 = arith.index_cast %365 : i32 to index
    %c0_102 = arith.constant 0 : index
    %367 = vector.load %arg17[%366, %c0_102] : memref<16x128xf32, #tpu.memory_space<vmem>>, vector<2x128xf32>
    %368 = arith.truncf %361 : vector<2x32xf32> to vector<2x32xbf16>
    %cst_103 = arith.constant dense<0.000000e+00> : vector<2x128xf32>
    %369 = tpu.matmul %368, %291, %cst_103 {dimension_numbers = #tpu.dot_dimension_numbers<[1], [0], [0], [1], [0, 0, 1, 1], [], []>} : vector<2x32xbf16>, vector<32x128xbf16>, vector<2x128xf32> -> vector<2x128xf32>
    %370 = arith.addf %367, %369 : vector<2x128xf32>
    %371 = vector.extract_strided_slice %370 {offsets = [0, 0], sizes = [2, 32], strides = [1, 1]} : vector<2x128xf32> to vector<2x32xf32>
    %372 = arith.negf %371 : vector<2x32xf32>
    %373 = math.exp %372 : vector<2x32xf32>
    %cst_104 = arith.constant 1.000000e+00 : f32
    %374 = vector.broadcast %cst_104 : f32 to vector<2x32xf32>
    %375 = arith.addf %374, %373 : vector<2x32xf32>
    %376 = arith.divf %374, %375 : vector<2x32xf32>
    %377 = vector.extract_strided_slice %370 {offsets = [0, 32], sizes = [2, 32], strides = [1, 1]} : vector<2x128xf32> to vector<2x32xf32>
    %378 = arith.negf %377 : vector<2x32xf32>
    %379 = math.exp %378 : vector<2x32xf32>
    %cst_105 = arith.constant 1.000000e+00 : f32
    %380 = vector.broadcast %cst_105 : f32 to vector<2x32xf32>
    %381 = arith.addf %380, %379 : vector<2x32xf32>
    %382 = arith.divf %380, %381 : vector<2x32xf32>
    %383 = vector.extract_strided_slice %370 {offsets = [0, 64], sizes = [2, 32], strides = [1, 1]} : vector<2x128xf32> to vector<2x32xf32>
    %384 = math.tanh %383 : vector<2x32xf32>
    %385 = vector.extract_strided_slice %370 {offsets = [0, 96], sizes = [2, 32], strides = [1, 1]} : vector<2x128xf32> to vector<2x32xf32>
    %386 = arith.negf %385 : vector<2x32xf32>
    %387 = math.exp %386 : vector<2x32xf32>
    %cst_106 = arith.constant 1.000000e+00 : f32
    %388 = vector.broadcast %cst_106 : f32 to vector<2x32xf32>
    %389 = arith.addf %388, %387 : vector<2x32xf32>
    %390 = arith.divf %388, %389 : vector<2x32xf32>
    %391 = arith.mulf %382, %359 : vector<2x32xf32>
    %392 = arith.mulf %376, %384 : vector<2x32xf32>
    %393 = arith.addf %391, %392 : vector<2x32xf32>
    %394 = math.tanh %393 : vector<2x32xf32>
    %395 = arith.mulf %390, %394 : vector<2x32xf32>
    %396 = arith.index_cast %365 : i32 to index
    %c0_107 = arith.constant 0 : index
    %397 = vector.load %arg16[%396, %c0_107] : memref<16x32xf32, #tpu.memory_space<vmem>>, vector<2x32xf32>
    tpu.vector_store %arg16[%396, %c0_107], %395 {strides = array<i32>} : memref<16x32xf32, #tpu.memory_space<vmem>>, vector<2x32xf32>,
    %c3_i32_108 = arith.constant 3 : i32
    %c2_i32_109 = arith.constant 2 : i32
    %398 = arith.muli %c3_i32_108, %c2_i32_109 : i32
    %399 = tpu.assume_multiple %398, 2 : i32
    %400 = arith.index_cast %399 : i32 to index
    %c0_110 = arith.constant 0 : index
    %401 = vector.load %arg17[%400, %c0_110] : memref<16x128xf32, #tpu.memory_space<vmem>>, vector<2x128xf32>
    %402 = arith.truncf %395 : vector<2x32xf32> to vector<2x32xbf16>
    %cst_111 = arith.constant dense<0.000000e+00> : vector<2x128xf32>
    %403 = tpu.matmul %402, %291, %cst_111 {dimension_numbers = #tpu.dot_dimension_numbers<[1], [0], [0], [1], [0, 0, 1, 1], [], []>} : vector<2x32xbf16>, vector<32x128xbf16>, vector<2x128xf32> -> vector<2x128xf32>
    %404 = arith.addf %401, %403 : vector<2x128xf32>
    %405 = vector.extract_strided_slice %404 {offsets = [0, 0], sizes = [2, 32], strides = [1, 1]} : vector<2x128xf32> to vector<2x32xf32>
    %406 = arith.negf %405 : vector<2x32xf32>
    %407 = math.exp %406 : vector<2x32xf32>
    %cst_112 = arith.constant 1.000000e+00 : f32
    %408 = vector.broadcast %cst_112 : f32 to vector<2x32xf32>
    %409 = arith.addf %408, %407 : vector<2x32xf32>
    %410 = arith.divf %408, %409 : vector<2x32xf32>
    %411 = vector.extract_strided_slice %404 {offsets = [0, 32], sizes = [2, 32], strides = [1, 1]} : vector<2x128xf32> to vector<2x32xf32>
    %412 = arith.negf %411 : vector<2x32xf32>
    %413 = math.exp %412 : vector<2x32xf32>
    %cst_113 = arith.constant 1.000000e+00 : f32
    %414 = vector.broadcast %cst_113 : f32 to vector<2x32xf32>
    %415 = arith.addf %414, %413 : vector<2x32xf32>
    %416 = arith.divf %414, %415 : vector<2x32xf32>
    %417 = vector.extract_strided_slice %404 {offsets = [0, 64], sizes = [2, 32], strides = [1, 1]} : vector<2x128xf32> to vector<2x32xf32>
    %418 = math.tanh %417 : vector<2x32xf32>
    %419 = vector.extract_strided_slice %404 {offsets = [0, 96], sizes = [2, 32], strides = [1, 1]} : vector<2x128xf32> to vector<2x32xf32>
    %420 = arith.negf %419 : vector<2x32xf32>
    %421 = math.exp %420 : vector<2x32xf32>
    %cst_114 = arith.constant 1.000000e+00 : f32
    %422 = vector.broadcast %cst_114 : f32 to vector<2x32xf32>
    %423 = arith.addf %422, %421 : vector<2x32xf32>
    %424 = arith.divf %422, %423 : vector<2x32xf32>
    %425 = arith.mulf %416, %393 : vector<2x32xf32>
    %426 = arith.mulf %410, %418 : vector<2x32xf32>
    %427 = arith.addf %425, %426 : vector<2x32xf32>
    %428 = math.tanh %427 : vector<2x32xf32>
    %429 = arith.mulf %424, %428 : vector<2x32xf32>
    %430 = arith.index_cast %399 : i32 to index
    %c0_115 = arith.constant 0 : index
    %431 = vector.load %arg16[%430, %c0_115] : memref<16x32xf32, #tpu.memory_space<vmem>>, vector<2x32xf32>
    tpu.vector_store %arg16[%430, %c0_115], %429 {strides = array<i32>} : memref<16x32xf32, #tpu.memory_space<vmem>>, vector<2x32xf32>,
    %c4_i32_116 = arith.constant 4 : i32
    %c2_i32_117 = arith.constant 2 : i32
    %432 = arith.muli %c4_i32_116, %c2_i32_117 : i32
    %433 = tpu.assume_multiple %432, 2 : i32
    %434 = arith.index_cast %433 : i32 to index
    %c0_118 = arith.constant 0 : index
    %435 = vector.load %arg17[%434, %c0_118] : memref<16x128xf32, #tpu.memory_space<vmem>>, vector<2x128xf32>
    %436 = arith.truncf %429 : vector<2x32xf32> to vector<2x32xbf16>
    %cst_119 = arith.constant dense<0.000000e+00> : vector<2x128xf32>
    %437 = tpu.matmul %436, %291, %cst_119 {dimension_numbers = #tpu.dot_dimension_numbers<[1], [0], [0], [1], [0, 0, 1, 1], [], []>} : vector<2x32xbf16>, vector<32x128xbf16>, vector<2x128xf32> -> vector<2x128xf32>
    %438 = arith.addf %435, %437 : vector<2x128xf32>
    %439 = vector.extract_strided_slice %438 {offsets = [0, 0], sizes = [2, 32], strides = [1, 1]} : vector<2x128xf32> to vector<2x32xf32>
    %440 = arith.negf %439 : vector<2x32xf32>
    %441 = math.exp %440 : vector<2x32xf32>
    %cst_120 = arith.constant 1.000000e+00 : f32
    %442 = vector.broadcast %cst_120 : f32 to vector<2x32xf32>
    %443 = arith.addf %442, %441 : vector<2x32xf32>
    %444 = arith.divf %442, %443 : vector<2x32xf32>
    %445 = vector.extract_strided_slice %438 {offsets = [0, 32], sizes = [2, 32], strides = [1, 1]} : vector<2x128xf32> to vector<2x32xf32>
    %446 = arith.negf %445 : vector<2x32xf32>
    %447 = math.exp %446 : vector<2x32xf32>
    %cst_121 = arith.constant 1.000000e+00 : f32
    %448 = vector.broadcast %cst_121 : f32 to vector<2x32xf32>
    %449 = arith.addf %448, %447 : vector<2x32xf32>
    %450 = arith.divf %448, %449 : vector<2x32xf32>
    %451 = vector.extract_strided_slice %438 {offsets = [0, 64], sizes = [2, 32], strides = [1, 1]} : vector<2x128xf32> to vector<2x32xf32>
    %452 = math.tanh %451 : vector<2x32xf32>
    %453 = vector.extract_strided_slice %438 {offsets = [0, 96], sizes = [2, 32], strides = [1, 1]} : vector<2x128xf32> to vector<2x32xf32>
    %454 = arith.negf %453 : vector<2x32xf32>
    %455 = math.exp %454 : vector<2x32xf32>
    %cst_122 = arith.constant 1.000000e+00 : f32
    %456 = vector.broadcast %cst_122 : f32 to vector<2x32xf32>
    %457 = arith.addf %456, %455 : vector<2x32xf32>
    %458 = arith.divf %456, %457 : vector<2x32xf32>
    %459 = arith.mulf %450, %427 : vector<2x32xf32>
    %460 = arith.mulf %444, %452 : vector<2x32xf32>
    %461 = arith.addf %459, %460 : vector<2x32xf32>
    %462 = math.tanh %461 : vector<2x32xf32>
    %463 = arith.mulf %458, %462 : vector<2x32xf32>
    %464 = arith.index_cast %433 : i32 to index
    %c0_123 = arith.constant 0 : index
    %465 = vector.load %arg16[%464, %c0_123] : memref<16x32xf32, #tpu.memory_space<vmem>>, vector<2x32xf32>
    tpu.vector_store %arg16[%464, %c0_123], %463 {strides = array<i32>} : memref<16x32xf32, #tpu.memory_space<vmem>>, vector<2x32xf32>,
    %c5_i32_124 = arith.constant 5 : i32
    %c2_i32_125 = arith.constant 2 : i32
    %466 = arith.muli %c5_i32_124, %c2_i32_125 : i32
    %467 = tpu.assume_multiple %466, 2 : i32
    %468 = arith.index_cast %467 : i32 to index
    %c0_126 = arith.constant 0 : index
    %469 = vector.load %arg17[%468, %c0_126] : memref<16x128xf32, #tpu.memory_space<vmem>>, vector<2x128xf32>
    %470 = arith.truncf %463 : vector<2x32xf32> to vector<2x32xbf16>
    %cst_127 = arith.constant dense<0.000000e+00> : vector<2x128xf32>
    %471 = tpu.matmul %470, %291, %cst_127 {dimension_numbers = #tpu.dot_dimension_numbers<[1], [0], [0], [1], [0, 0, 1, 1], [], []>} : vector<2x32xbf16>, vector<32x128xbf16>, vector<2x128xf32> -> vector<2x128xf32>
    %472 = arith.addf %469, %471 : vector<2x128xf32>
    %473 = vector.extract_strided_slice %472 {offsets = [0, 0], sizes = [2, 32], strides = [1, 1]} : vector<2x128xf32> to vector<2x32xf32>
    %474 = arith.negf %473 : vector<2x32xf32>
    %475 = math.exp %474 : vector<2x32xf32>
    %cst_128 = arith.constant 1.000000e+00 : f32
    %476 = vector.broadcast %cst_128 : f32 to vector<2x32xf32>
    %477 = arith.addf %476, %475 : vector<2x32xf32>
    %478 = arith.divf %476, %477 : vector<2x32xf32>
    %479 = vector.extract_strided_slice %472 {offsets = [0, 32], sizes = [2, 32], strides = [1, 1]} : vector<2x128xf32> to vector<2x32xf32>
    %480 = arith.negf %479 : vector<2x32xf32>
    %481 = math.exp %480 : vector<2x32xf32>
    %cst_129 = arith.constant 1.000000e+00 : f32
    %482 = vector.broadcast %cst_129 : f32 to vector<2x32xf32>
    %483 = arith.addf %482, %481 : vector<2x32xf32>
    %484 = arith.divf %482, %483 : vector<2x32xf32>
    %485 = vector.extract_strided_slice %472 {offsets = [0, 64], sizes = [2, 32], strides = [1, 1]} : vector<2x128xf32> to vector<2x32xf32>
    %486 = math.tanh %485 : vector<2x32xf32>
    %487 = vector.extract_strided_slice %472 {offsets = [0, 96], sizes = [2, 32], strides = [1, 1]} : vector<2x128xf32> to vector<2x32xf32>
    %488 = arith.negf %487 : vector<2x32xf32>
    %489 = math.exp %488 : vector<2x32xf32>
    %cst_130 = arith.constant 1.000000e+00 : f32
    %490 = vector.broadcast %cst_130 : f32 to vector<2x32xf32>
    %491 = arith.addf %490, %489 : vector<2x32xf32>
    %492 = arith.divf %490, %491 : vector<2x32xf32>
    %493 = arith.mulf %484, %461 : vector<2x32xf32>
    %494 = arith.mulf %478, %486 : vector<2x32xf32>
    %495 = arith.addf %493, %494 : vector<2x32xf32>
    %496 = math.tanh %495 : vector<2x32xf32>
    %497 = arith.mulf %492, %496 : vector<2x32xf32>
    %498 = arith.index_cast %467 : i32 to index
    %c0_131 = arith.constant 0 : index
    %499 = vector.load %arg16[%498, %c0_131] : memref<16x32xf32, #tpu.memory_space<vmem>>, vector<2x32xf32>
    tpu.vector_store %arg16[%498, %c0_131], %497 {strides = array<i32>} : memref<16x32xf32, #tpu.memory_space<vmem>>, vector<2x32xf32>,
    %c6_i32_132 = arith.constant 6 : i32
    %c2_i32_133 = arith.constant 2 : i32
    %500 = arith.muli %c6_i32_132, %c2_i32_133 : i32
    %501 = tpu.assume_multiple %500, 2 : i32
    %502 = arith.index_cast %501 : i32 to index
    %c0_134 = arith.constant 0 : index
    %503 = vector.load %arg17[%502, %c0_134] : memref<16x128xf32, #tpu.memory_space<vmem>>, vector<2x128xf32>
    %504 = arith.truncf %497 : vector<2x32xf32> to vector<2x32xbf16>
    %cst_135 = arith.constant dense<0.000000e+00> : vector<2x128xf32>
    %505 = tpu.matmul %504, %291, %cst_135 {dimension_numbers = #tpu.dot_dimension_numbers<[1], [0], [0], [1], [0, 0, 1, 1], [], []>} : vector<2x32xbf16>, vector<32x128xbf16>, vector<2x128xf32> -> vector<2x128xf32>
    %506 = arith.addf %503, %505 : vector<2x128xf32>
    %507 = vector.extract_strided_slice %506 {offsets = [0, 0], sizes = [2, 32], strides = [1, 1]} : vector<2x128xf32> to vector<2x32xf32>
    %508 = arith.negf %507 : vector<2x32xf32>
    %509 = math.exp %508 : vector<2x32xf32>
    %cst_136 = arith.constant 1.000000e+00 : f32
    %510 = vector.broadcast %cst_136 : f32 to vector<2x32xf32>
    %511 = arith.addf %510, %509 : vector<2x32xf32>
    %512 = arith.divf %510, %511 : vector<2x32xf32>
    %513 = vector.extract_strided_slice %506 {offsets = [0, 32], sizes = [2, 32], strides = [1, 1]} : vector<2x128xf32> to vector<2x32xf32>
    %514 = arith.negf %513 : vector<2x32xf32>
    %515 = math.exp %514 : vector<2x32xf32>
    %cst_137 = arith.constant 1.000000e+00 : f32
    %516 = vector.broadcast %cst_137 : f32 to vector<2x32xf32>
    %517 = arith.addf %516, %515 : vector<2x32xf32>
    %518 = arith.divf %516, %517 : vector<2x32xf32>
    %519 = vector.extract_strided_slice %506 {offsets = [0, 64], sizes = [2, 32], strides = [1, 1]} : vector<2x128xf32> to vector<2x32xf32>
    %520 = math.tanh %519 : vector<2x32xf32>
    %521 = vector.extract_strided_slice %506 {offsets = [0, 96], sizes = [2, 32], strides = [1, 1]} : vector<2x128xf32> to vector<2x32xf32>
    %522 = arith.negf %521 : vector<2x32xf32>
    %523 = math.exp %522 : vector<2x32xf32>
    %cst_138 = arith.constant 1.000000e+00 : f32
    %524 = vector.broadcast %cst_138 : f32 to vector<2x32xf32>
    %525 = arith.addf %524, %523 : vector<2x32xf32>
    %526 = arith.divf %524, %525 : vector<2x32xf32>
    %527 = arith.mulf %518, %495 : vector<2x32xf32>
    %528 = arith.mulf %512, %520 : vector<2x32xf32>
    %529 = arith.addf %527, %528 : vector<2x32xf32>
    %530 = math.tanh %529 : vector<2x32xf32>
    %531 = arith.mulf %526, %530 : vector<2x32xf32>
    %532 = arith.index_cast %501 : i32 to index
    %c0_139 = arith.constant 0 : index
    %533 = vector.load %arg16[%532, %c0_139] : memref<16x32xf32, #tpu.memory_space<vmem>>, vector<2x32xf32>
    tpu.vector_store %arg16[%532, %c0_139], %531 {strides = array<i32>} : memref<16x32xf32, #tpu.memory_space<vmem>>, vector<2x32xf32>,
    %c7_i32_140 = arith.constant 7 : i32
    %c2_i32_141 = arith.constant 2 : i32
    %534 = arith.muli %c7_i32_140, %c2_i32_141 : i32
    %535 = tpu.assume_multiple %534, 2 : i32
    %536 = arith.index_cast %535 : i32 to index
    %c0_142 = arith.constant 0 : index
    %537 = vector.load %arg17[%536, %c0_142] : memref<16x128xf32, #tpu.memory_space<vmem>>, vector<2x128xf32>
    %538 = arith.truncf %531 : vector<2x32xf32> to vector<2x32xbf16>
    %cst_143 = arith.constant dense<0.000000e+00> : vector<2x128xf32>
    %539 = tpu.matmul %538, %291, %cst_143 {dimension_numbers = #tpu.dot_dimension_numbers<[1], [0], [0], [1], [0, 0, 1, 1], [], []>} : vector<2x32xbf16>, vector<32x128xbf16>, vector<2x128xf32> -> vector<2x128xf32>
    %540 = arith.addf %537, %539 : vector<2x128xf32>
    %541 = vector.extract_strided_slice %540 {offsets = [0, 0], sizes = [2, 32], strides = [1, 1]} : vector<2x128xf32> to vector<2x32xf32>
    %542 = arith.negf %541 : vector<2x32xf32>
    %543 = math.exp %542 : vector<2x32xf32>
    %cst_144 = arith.constant 1.000000e+00 : f32
    %544 = vector.broadcast %cst_144 : f32 to vector<2x32xf32>
    %545 = arith.addf %544, %543 : vector<2x32xf32>
    %546 = arith.divf %544, %545 : vector<2x32xf32>
    %547 = vector.extract_strided_slice %540 {offsets = [0, 32], sizes = [2, 32], strides = [1, 1]} : vector<2x128xf32> to vector<2x32xf32>
    %548 = arith.negf %547 : vector<2x32xf32>
    %549 = math.exp %548 : vector<2x32xf32>
    %cst_145 = arith.constant 1.000000e+00 : f32
    %550 = vector.broadcast %cst_145 : f32 to vector<2x32xf32>
    %551 = arith.addf %550, %549 : vector<2x32xf32>
    %552 = arith.divf %550, %551 : vector<2x32xf32>
    %553 = vector.extract_strided_slice %540 {offsets = [0, 64], sizes = [2, 32], strides = [1, 1]} : vector<2x128xf32> to vector<2x32xf32>
    %554 = math.tanh %553 : vector<2x32xf32>
    %555 = vector.extract_strided_slice %540 {offsets = [0, 96], sizes = [2, 32], strides = [1, 1]} : vector<2x128xf32> to vector<2x32xf32>
    %556 = arith.negf %555 : vector<2x32xf32>
    %557 = math.exp %556 : vector<2x32xf32>
    %cst_146 = arith.constant 1.000000e+00 : f32
    %558 = vector.broadcast %cst_146 : f32 to vector<2x32xf32>
    %559 = arith.addf %558, %557 : vector<2x32xf32>
    %560 = arith.divf %558, %559 : vector<2x32xf32>
    %561 = arith.mulf %552, %529 : vector<2x32xf32>
    %562 = arith.mulf %546, %554 : vector<2x32xf32>
    %563 = arith.addf %561, %562 : vector<2x32xf32>
    %564 = math.tanh %563 : vector<2x32xf32>
    %565 = arith.mulf %560, %564 : vector<2x32xf32>
    %566 = arith.index_cast %535 : i32 to index
    %c0_147 = arith.constant 0 : index
    %567 = vector.load %arg16[%566, %c0_147] : memref<16x32xf32, #tpu.memory_space<vmem>>, vector<2x32xf32>
    tpu.vector_store %arg16[%566, %c0_147], %565 {strides = array<i32>} : memref<16x32xf32, #tpu.memory_space<vmem>>, vector<2x32xf32>,
    %c8_i32_148 = arith.constant 8 : i32
    %c1_149 = arith.constant 1 : index
    %c0_150 = arith.constant 0 : index
    %c0_151 = arith.constant 0 : index
    %568 = vector.load %arg14[%c1_149, %c0_150, %c0_151] : memref<2x2x32xf32, #tpu.memory_space<vmem>>, vector<1x2x32xf32>
    %569 = vector.shape_cast %568 : vector<1x2x32xf32> to vector<2x32xf32>
    %570 = vector.shape_cast %565 : vector<2x32xf32> to vector<1x2x32xf32>
    tpu.vector_store %arg14[%c1_149, %c0_150, %c0_151], %570 {strides = array<i32>} : memref<2x2x32xf32, #tpu.memory_space<vmem>>, vector<1x2x32xf32>,
    %c1_152 = arith.constant 1 : index
    %c0_153 = arith.constant 0 : index
    %c0_154 = arith.constant 0 : index
    %571 = vector.load %arg15[%c1_152, %c0_153, %c0_154] : memref<2x2x32xf32, #tpu.memory_space<vmem>>, vector<1x2x32xf32>
    %572 = vector.shape_cast %571 : vector<1x2x32xf32> to vector<2x32xf32>
    %573 = vector.shape_cast %563 : vector<2x32xf32> to vector<1x2x32xf32>
    tpu.vector_store %arg15[%c1_152, %c0_153, %c0_154], %573 {strides = array<i32>} : memref<2x2x32xf32, #tpu.memory_space<vmem>>, vector<1x2x32xf32>,
    %c0_155 = arith.constant 0 : index
    %c0_156 = arith.constant 0 : index
    %574 = vector.load %arg16[%c0_155, %c0_156] : memref<16x32xf32, #tpu.memory_space<vmem>>, vector<16x32xf32>
    %575 = arith.truncf %574 : vector<16x32xf32> to vector<16x32xbf16>
    %c0_157 = arith.constant 0 : index
    %c0_158 = arith.constant 0 : index
    %576 = vector.load %arg9[%c0_157, %c0_158] : memref<32x64xbf16, #tpu.memory_space<vmem>>, vector<32x64xbf16>
    %cst_159 = arith.constant dense<0.000000e+00> : vector<16x64xf32>
    %577 = tpu.matmul %575, %576, %cst_159 {dimension_numbers = #tpu.dot_dimension_numbers<[1], [0], [0], [1], [0, 0, 1, 1], [], []>} : vector<16x32xbf16>, vector<32x64xbf16>, vector<16x64xf32> -> vector<16x64xf32>
    %c0_160 = arith.constant 0 : index
    %c0_161 = arith.constant 0 : index
    %578 = vector.load %arg18[%c0_160, %c0_161] : memref<16x64xf32, #tpu.memory_space<vmem>>, vector<16x64xf32>
    tpu.vector_store %arg18[%c0_160, %c0_161], %577 {strides = array<i32>} : memref<16x64xf32, #tpu.memory_space<vmem>>, vector<16x64xf32>,
    %c0_162 = arith.constant 0 : index
    %c0_163 = arith.constant 0 : index
    %579 = vector.load %arg10[%c0_162, %c0_163] : memref<32x32xbf16, #tpu.memory_space<vmem>>, vector<32x32xbf16>
    %cst_164 = arith.constant dense<0.000000e+00> : vector<16x32xf32>
    %580 = tpu.matmul %575, %579, %cst_164 {dimension_numbers = #tpu.dot_dimension_numbers<[1], [0], [0], [1], [0, 0, 1, 1], [], []>} : vector<16x32xbf16>, vector<32x32xbf16>, vector<16x32xf32> -> vector<16x32xf32>
    %c0_165 = arith.constant 0 : index
    %c0_166 = arith.constant 0 : index
    %581 = vector.load %arg19[%c0_165, %c0_166] : memref<16x32xf32, #tpu.memory_space<vmem>>, vector<16x32xf32>
    tpu.vector_store %arg19[%c0_165, %c0_166], %580 {strides = array<i32>} : memref<16x32xf32, #tpu.memory_space<vmem>>, vector<16x32xf32>,
    %c0_167 = arith.constant 0 : index
    %c0_168 = arith.constant 0 : index
    %582 = vector.load %arg8[%c0_167, %c0_168] : memref<2x8xf32, #tpu.memory_space<vmem>>, vector<2x8xf32>
    %c0_169 = arith.constant 0 : index
    %c0_170 = arith.constant 0 : index
    %583 = vector.load %arg11[%c0_169, %c0_170] : memref<64x32xbf16, #tpu.memory_space<vmem>>, vector<64x32xbf16>
    %c0_171 = arith.constant 0 : index
    %c0_172 = arith.constant 0 : index
    %584 = vector.load %arg12[%c0_171, %c0_172] : memref<1x32xf32, #tpu.memory_space<vmem>>, vector<1x32xf32>
    %585 = vector.shape_cast %584 : vector<1x32xf32> to vector<1x32xf32>
    %586 = vector.broadcast %585 : vector<1x32xf32> to vector<8x32xf32>
    %c0_173 = arith.constant 0 : index
    %c0_174 = arith.constant 0 : index
    %c0_175 = arith.constant 0 : index
    %587 = vector.load %arg7[%c0_173, %c0_174, %c0_175] : memref<2x8x64xbf16, #tpu.memory_space<vmem>>, vector<1x8x64xbf16>
    %588 = vector.shape_cast %587 : vector<1x8x64xbf16> to vector<8x64xbf16>
    %c0_176 = arith.constant 0 : index
    %c0_177 = arith.constant 0 : index
    %589 = tpu.strided_load %arg18[%c0_176, %c0_177] {strides = array<i32: 2, 1>} : memref<16x64xf32, #tpu.memory_space<vmem>>, vector<8x64xf32>
    %590 = arith.truncf %589 : vector<8x64xf32> to vector<8x64xbf16>
    %cst_178 = arith.constant dense<0.000000e+00> : vector<8x8xf32>
    %591 = tpu.matmul %590, %588, %cst_178 {dimension_numbers = #tpu.dot_dimension_numbers<[1], [1], [0], [0], [0, 0, 1, 0], [], []>} : vector<8x64xbf16>, vector<8x64xbf16>, vector<8x8xf32> -> vector<8x8xf32>
    %592 = vector.extract_strided_slice %582 {offsets = [0, 0], sizes = [1, 8], strides = [1, 1]} : vector<2x8xf32> to vector<1x8xf32>
    %cst_179 = arith.constant 5.000000e-01 : f32
    %593 = vector.broadcast %cst_179 : f32 to vector<1x8xf32>
    %594 = arith.cmpf ogt, %592, %593 : vector<1x8xf32>
    %cst_180 = arith.constant -1.000000e+09 : f32
    %595 = vector.shape_cast %594 : vector<1x8xi1> to vector<1x8xi1>
    %596 = vector.broadcast %595 : vector<1x8xi1> to vector<8x8xi1>
    %597 = vector.broadcast %cst_180 : f32 to vector<8x8xf32>
    %598 = arith.select %596, %591, %597 : vector<8x8xi1>, vector<8x8xf32>
    %cst_181 = arith.constant dense<0xFF800000> : vector<8xf32>
    %599 = vector.multi_reduction <maximumf>, %598, %cst_181 [1] : vector<8x8xf32> to vector<8xf32>
    %600 = vector.shape_cast %599 : vector<8xf32> to vector<8x1xf32>
    %601 = vector.broadcast %600 : vector<8x1xf32> to vector<8x8xf32>
    %602 = arith.subf %598, %601 : vector<8x8xf32>
    %603 = math.exp %602 : vector<8x8xf32>
    %cst_182 = arith.constant dense<0.000000e+00> : vector<8xf32>
    %604 = vector.multi_reduction <add>, %603, %cst_182 [1] : vector<8x8xf32> to vector<8xf32>
    %605 = vector.shape_cast %604 : vector<8xf32> to vector<8x1xf32>
    %606 = vector.broadcast %605 : vector<8x1xf32> to vector<8x8xf32>
    %607 = arith.divf %603, %606 : vector<8x8xf32>
    %608 = arith.truncf %607 : vector<8x8xf32> to vector<8x8xbf16>
    %cst_183 = arith.constant dense<0.000000e+00> : vector<8x64xf32>
    %609 = tpu.matmul %608, %588, %cst_183 {dimension_numbers = #tpu.dot_dimension_numbers<[1], [0], [0], [1], [0, 0, 1, 1], [], []>} : vector<8x8xbf16>, vector<8x64xbf16>, vector<8x64xf32> -> vector<8x64xf32>
    %c0_184 = arith.constant 0 : index
    %c0_185 = arith.constant 0 : index
    %610 = tpu.strided_load %arg19[%c0_184, %c0_185] {strides = array<i32: 2, 1>} : memref<16x32xf32, #tpu.memory_space<vmem>>, vector<8x32xf32>
    %611 = arith.truncf %609 : vector<8x64xf32> to vector<8x64xbf16>
    %cst_186 = arith.constant dense<0.000000e+00> : vector<8x32xf32>
    %612 = tpu.matmul %611, %583, %cst_186 {dimension_numbers = #tpu.dot_dimension_numbers<[1], [0], [0], [1], [0, 0, 1, 1], [], []>} : vector<8x64xbf16>, vector<64x32xbf16>, vector<8x32xf32> -> vector<8x32xf32>
    %613 = arith.addf %610, %612 : vector<8x32xf32>
    %614 = arith.addf %613, %586 : vector<8x32xf32>
    %c0_187 = arith.constant 0 : index
    %c0_188 = arith.constant 0 : index
    %c0_189 = arith.constant 0 : index
    %615 = vector.load %arg13[%c0_187, %c0_188, %c0_189] : memref<2x8x32xf32, #tpu.memory_space<vmem>>, vector<1x8x32xf32>
    %616 = vector.shape_cast %615 : vector<1x8x32xf32> to vector<8x32xf32>
    %617 = vector.shape_cast %614 : vector<8x32xf32> to vector<1x8x32xf32>
    tpu.vector_store %arg13[%c0_187, %c0_188, %c0_189], %617 {strides = array<i32>} : memref<2x8x32xf32, #tpu.memory_space<vmem>>, vector<1x8x32xf32>,
    %c1_190 = arith.constant 1 : index
    %c0_191 = arith.constant 0 : index
    %c0_192 = arith.constant 0 : index
    %618 = vector.load %arg7[%c1_190, %c0_191, %c0_192] : memref<2x8x64xbf16, #tpu.memory_space<vmem>>, vector<1x8x64xbf16>
    %619 = vector.shape_cast %618 : vector<1x8x64xbf16> to vector<8x64xbf16>
    %c1_193 = arith.constant 1 : index
    %c0_194 = arith.constant 0 : index
    %620 = tpu.strided_load %arg18[%c1_193, %c0_194] {strides = array<i32: 2, 1>} : memref<16x64xf32, #tpu.memory_space<vmem>>, vector<8x64xf32>
    %621 = arith.truncf %620 : vector<8x64xf32> to vector<8x64xbf16>
    %cst_195 = arith.constant dense<0.000000e+00> : vector<8x8xf32>
    %622 = tpu.matmul %621, %619, %cst_195 {dimension_numbers = #tpu.dot_dimension_numbers<[1], [1], [0], [0], [0, 0, 1, 0], [], []>} : vector<8x64xbf16>, vector<8x64xbf16>, vector<8x8xf32> -> vector<8x8xf32>
    %623 = vector.extract_strided_slice %582 {offsets = [1, 0], sizes = [1, 8], strides = [1, 1]} : vector<2x8xf32> to vector<1x8xf32>
    %cst_196 = arith.constant 5.000000e-01 : f32
    %624 = vector.broadcast %cst_196 : f32 to vector<1x8xf32>
    %625 = arith.cmpf ogt, %623, %624 : vector<1x8xf32>
    %cst_197 = arith.constant -1.000000e+09 : f32
    %626 = vector.shape_cast %625 : vector<1x8xi1> to vector<1x8xi1>
    %627 = vector.broadcast %626 : vector<1x8xi1> to vector<8x8xi1>
    %628 = vector.broadcast %cst_197 : f32 to vector<8x8xf32>
    %629 = arith.select %627, %622, %628 : vector<8x8xi1>, vector<8x8xf32>
    %cst_198 = arith.constant dense<0xFF800000> : vector<8xf32>
    %630 = vector.multi_reduction <maximumf>, %629, %cst_198 [1] : vector<8x8xf32> to vector<8xf32>
    %631 = vector.shape_cast %630 : vector<8xf32> to vector<8x1xf32>
    %632 = vector.broadcast %631 : vector<8x1xf32> to vector<8x8xf32>
    %633 = arith.subf %629, %632 : vector<8x8xf32>
    %634 = math.exp %633 : vector<8x8xf32>
    %cst_199 = arith.constant dense<0.000000e+00> : vector<8xf32>
    %635 = vector.multi_reduction <add>, %634, %cst_199 [1] : vector<8x8xf32> to vector<8xf32>
    %636 = vector.shape_cast %635 : vector<8xf32> to vector<8x1xf32>
    %637 = vector.broadcast %636 : vector<8x1xf32> to vector<8x8xf32>
    %638 = arith.divf %634, %637 : vector<8x8xf32>
    %639 = arith.truncf %638 : vector<8x8xf32> to vector<8x8xbf16>
    %cst_200 = arith.constant dense<0.000000e+00> : vector<8x64xf32>
    %640 = tpu.matmul %639, %619, %cst_200 {dimension_numbers = #tpu.dot_dimension_numbers<[1], [0], [0], [1], [0, 0, 1, 1], [], []>} : vector<8x8xbf16>, vector<8x64xbf16>, vector<8x64xf32> -> vector<8x64xf32>
    %c1_201 = arith.constant 1 : index
    %c0_202 = arith.constant 0 : index
    %641 = tpu.strided_load %arg19[%c1_201, %c0_202] {strides = array<i32: 2, 1>} : memref<16x32xf32, #tpu.memory_space<vmem>>, vector<8x32xf32>
    %642 = arith.truncf %640 : vector<8x64xf32> to vector<8x64xbf16>
    %cst_203 = arith.constant dense<0.000000e+00> : vector<8x32xf32>
    %643 = tpu.matmul %642, %583, %cst_203 {dimension_numbers = #tpu.dot_dimension_numbers<[1], [0], [0], [1], [0, 0, 1, 1], [], []>} : vector<8x64xbf16>, vector<64x32xbf16>, vector<8x32xf32> -> vector<8x32xf32>
    %644 = arith.addf %641, %643 : vector<8x32xf32>
    %645 = arith.addf %644, %586 : vector<8x32xf32>
    %c1_204 = arith.constant 1 : index
    %c0_205 = arith.constant 0 : index
    %c0_206 = arith.constant 0 : index
    %646 = vector.load %arg13[%c1_204, %c0_205, %c0_206] : memref<2x8x32xf32, #tpu.memory_space<vmem>>, vector<1x8x32xf32>
    %647 = vector.shape_cast %646 : vector<1x8x32xf32> to vector<8x32xf32>
    %648 = vector.shape_cast %645 : vector<8x32xf32> to vector<1x8x32xf32>
    tpu.vector_store %arg13[%c1_204, %c0_205, %c0_206], %648 {strides = array<i32>} : memref<2x8x32xf32, #tpu.memory_space<vmem>>, vector<1x8x32xf32>,
    return
  }
}

</mosaic_0001>

<bundles_post_ra>
// kernel: tpu_custom_call.1
= control target key start
LH: loop header
LB: loop body
LE: loop exit
PB: predicated region body
PF: predicated region fallthrough
CT: control target
= control target key end

     0   :  { %21 = vsyncpa [#allocation7], 0  ;;  %s3456_s0 = inlined_call_operand.vmem [shape: f32[16,128], index: 0, kind: input, shape index: {}]   ;;  %s3457_s1 = inlined_call_operand.hbm [shape: f32[2,2,32], index: 1, kind: input, shape index: {}]   ;;  %s3458_s2 = inlined_call_operand.hbm [shape: f32[2,2,32], index: 2, kind: input, shape index: {}]   ;;  %s3459_s3 = inlined_call_operand.vmem [shape: bf16[32,128], index: 3, kind: input, shape index: {}]   ;;  %s3460_s4 = inlined_call_operand.vmem [shape: bf16[32,128], index: 4, kind: input, shape index: {}]   ;;  %s3461_s5 = inlined_call_operand.hbm [shape: bf16[32,128], index: 5, kind: input, shape index: {}]   ;;  %s3462_s6 = inlined_call_operand.hbm [shape: f32[1,128], index: 6, kind: input, shape index: {}]   ;;  %s3463_s7 = inlined_call_operand.hbm [shape: bf16[2,8,64], index: 7, kind: input, shape index: {}]   ;;  %s3464_s8 = inlined_call_operand.vmem [shape: f32[2,8], index: 8, kind: input, shape index: {}]   ;;  %s3465_s9 = inlined_call_operand.vmem [shape: bf16[32,64], index: 9, kind: input, shape index: {}]   ;;  %s3466_s10 = inlined_call_operand.hbm [shape: bf16[32,32], index: 10, kind: input, shape index: {}]   ;;  %s3467_s11 = inlined_call_operand.vmem [shape: bf16[64,32], index: 11, kind: input, shape index: {}]   ;;  %s3468_s12 = inlined_call_operand.vmem [shape: f32[1,32], index: 12, kind: input, shape index: {}]   ;;  %s3469_s13 = inlined_call_operand.hbm [shape: f32[2,8,32], index: 13, kind: output, shape index: {0}]   ;;  %s3470_s14 = inlined_call_operand.hbm [shape: f32[2,2,32], index: 14, kind: output, shape index: {1}]   ;;  %s3471_s15 = inlined_call_operand.hbm [shape: f32[2,2,32], index: 15, kind: output, shape index: {2}]  }
   0x1   :  { %22 = vsyncpa [#allocation10], 0 }
   0x2   :  { %23 = vsyncpa [#allocation13], 0 }
   0x3   :  { %24 = vsyncpa [#allocation16], 0 }
   0x4   :  { %25 = vsyncpa [#allocation8], 0 }
   0x5   :  { %26 = vsyncpa [#allocation19], 0  ;;  %s2789_s18 = smov [#allocation9]   ;;  %s2790_s20 = smov [#allocation12]  }
   0x6   :  { %s46_s19 = sshll.u32 %s2789_s18, 4  ;;  %s75_s21 = sshll.u32 %s2790_s20, 4  ;;  %s47_s19 = int_to_ptr.vmem [resolvable:$true] %s46_s19  ;;  %s2888_s21 = int_to_ptr.vmem [resolvable:$true] %s75_s21 }
   0x7   :  { %s2579_s24 = scalar_lea.hbm %s3458_s2, 64 }
   0x8   :  { %p2580_p0 = scmp.ne.s32.totalorder %s3458_s2, %s2579_s24  ;;  %p2583_p1 = scmp.lt.u32.totalorder %s2579_s24, %s3458_s2 }
   0xa   :  { %p2585_p2 = pnand %p2583_p1, %p2580_p0 }
   0xc   :  { %2588 = shalt.err (!%p2585_p2)
}
   0xd   :  { %s2589_s29 = scalar_lea.vmem %s47_s19, 64  ;;  %p2594_p4 = scmp.lt.s32.totalorder %s47_s19, %s47_s19 }
   0xe   :  { %p2590_p3 = scmp.ne.s32.totalorder %s47_s19, %s2589_s29  ;;  %p2595_p5 = scmp.lt.s32.totalorder %s2589_s29, %s2589_s29 }
  0x10   :  { %p2596_p6 = por %p2595_p5, %p2594_p4 }
  0x12   :  { %p2597_p7 = pnand %p2596_p6, %p2590_p3 }
  0x14   :  { %2600 = shalt.err (!%p2597_p7)
}
  0x15   :  { %s2791_s30 = smov 32   ;;  %s2792_s16 = smov 2  }
  0x16   :  { %52 = dma.hbm_to_vmem [thread:$0]  %s3458_s2, 64, %s47_s19, [#allocation10], %s2791_s30, %s2791_s30, %s2792_s16  }
  0x17   :  { %s2601_s23 = scalar_lea.hbm %s3462_s6, 16 }
  0x18   :  { %p2602_p8 = scmp.ne.s32.totalorder %s3462_s6, %s2601_s23  ;;  %p2605_p9 = scmp.lt.u32.totalorder %s2601_s23, %s3462_s6 }
  0x1a   :  { %p2607_p10 = pnand %p2605_p9, %p2602_p8 }
  0x1c   :  { %2610 = shalt.err (!%p2607_p10)
}
  0x1d   :  { %s2611_s28 = scalar_lea.vmem %s2888_s21, 16  ;;  %s2615_s2 = scalar_lea.vmem %s2888_s21, 32 }
  0x1e   :  { %p2612_p11 = scmp.ne.s32.totalorder %s2888_s21, %s2611_s28  ;;  %p2616_p12 = scmp.lt.s32.totalorder %s2888_s21, %s2888_s21 }
  0x1f   :  { %p2617_p13 = scmp.lt.s32.totalorder %s2615_s2, %s2611_s28 }
  0x21   :  { %p2618_p0 = por %p2617_p13, %p2616_p12 }
  0x23   :  { %p2619_p1 = pnand %p2618_p0, %p2612_p11 }
  0x25   :  { %2622 = shalt.err (!%p2619_p1)
}
  0x26   :  { %78 = dma.hbm_to_vmem [thread:$0]  %s3462_s6, 16, %s2888_s21, [#allocation13]  }
  0x27   :  { %s2793_s17 = smov [#allocation6]   ;;  %s2794_s20 = smov [#allocation11]  }
  0x28   :  { %s34_s18 = sshll.u32 %s2793_s17, 4  ;;  %s62_s22 = sshll.u32 %s2794_s20, 4  ;;  %s35_s18 = int_to_ptr.vmem [resolvable:$true] %s34_s18  ;;  %s2923_s22 = int_to_ptr.vmem [resolvable:$true] %s62_s22 }
  0x29   :  { %s2623_s25 = scalar_lea.hbm %s3457_s1, 64 }
  0x2a   :  { %p2624_p2 = scmp.ne.s32.totalorder %s3457_s1, %s2623_s25  ;;  %p2627_p3 = scmp.lt.u32.totalorder %s2623_s25, %s3457_s1 }
  0x2c   :  { %p2629_p4 = pnand %p2627_p3, %p2624_p2 }
  0x2e   :  { %2632 = shalt.err (!%p2629_p4)
}
  0x2f   :  { %s2633_s6 = scalar_lea.vmem %s35_s18, 64  ;;  %p2638_p6 = scmp.lt.s32.totalorder %s35_s18, %s35_s18 }
  0x30   :  { %p2634_p5 = scmp.ne.s32.totalorder %s35_s18, %s2633_s6  ;;  %p2639_p7 = scmp.lt.s32.totalorder %s2633_s6, %s2633_s6 }
  0x32   :  { %p2640_p8 = por %p2639_p7, %p2638_p6 }
  0x34   :  { %p2641_p9 = pnand %p2640_p8, %p2634_p5 }
  0x36   :  { %2644 = shalt.err (!%p2641_p9)
}
  0x37   :  { %40 = dma.hbm_to_vmem [thread:$0]  %s3457_s1, 64, %s35_s18, [#allocation7], %s2791_s30, %s2791_s30, %s2792_s16  }
  0x38   :  { %s2645_s20 = scalar_lea.hbm %s3461_s5, 256 }
  0x39   :  { %p2646_p10 = scmp.ne.s32.totalorder %s3461_s5, %s2645_s20  ;;  %p2649_p11 = scmp.lt.u32.totalorder %s2645_s20, %s3461_s5 }
  0x3b   :  { %p2651_p12 = pnand %p2649_p11, %p2646_p10 }
  0x3d   :  { %2654 = shalt.err (!%p2651_p12)
}
  0x3e   :  { %s2655_s27 = scalar_lea.vmem %s2923_s22, 256  ;;  %p2660_p0 = scmp.lt.s32.totalorder %s2923_s22, %s2923_s22 }
  0x3f   :  { %p2656_p13 = scmp.ne.s32.totalorder %s2923_s22, %s2655_s27  ;;  %p2661_p1 = scmp.lt.s32.totalorder %s2655_s27, %s2655_s27 }
  0x41   :  { %p2662_p2 = por %p2661_p1, %p2660_p0 }
  0x43   :  { %p2663_p3 = pnand %p2662_p2, %p2656_p13 }
  0x45   :  { %2666 = shalt.err (!%p2663_p3)
}
  0x46   :  { %s2795_s1 = smov 64   ;;  %s2796_s18 = smov 4  }
  0x47   :  { %68 = dma.hbm_to_vmem [thread:$0]  %s3461_s5, 256, %s2923_s22, [#allocation10], %s2795_s1, %s2795_s1, %s2796_s18  }
  0x48   :  { %s2797_s6 = smov [#allocation14]   ;;  %s2798_s19 = smov [#allocation15]  }
  0x49   :  { %s84_s21 = sshll.u32 %s2797_s6, 4  ;;  %s100_s29 = sshll.u32 %s2798_s19, 4  ;;  %s85_s21 = int_to_ptr.vmem [resolvable:$true] %s84_s21  ;;  %s2960_s29 = int_to_ptr.vmem [resolvable:$true] %s100_s29 }
  0x4a   :  { %s2667_s23 = scalar_lea.hbm %s3463_s7, 128 }
  0x4b   :  { %p2668_p4 = scmp.ne.s32.totalorder %s3463_s7, %s2667_s23  ;;  %p2671_p5 = scmp.lt.u32.totalorder %s2667_s23, %s3463_s7 }
  0x4d   :  { %p2673_p6 = pnand %p2671_p5, %p2668_p4 }
  0x4f   :  { %2676 = shalt.err (!%p2673_p6)
}
  0x50   :  { %s2677_s5 = scalar_lea.vmem %s85_s21, 128  ;;  %p2682_p8 = scmp.lt.s32.totalorder %s85_s21, %s85_s21 }
  0x51   :  { %p2678_p7 = scmp.ne.s32.totalorder %s85_s21, %s2677_s5  ;;  %p2683_p9 = scmp.lt.s32.totalorder %s2677_s5, %s2677_s5 }
  0x53   :  { %p2684_p10 = por %p2683_p9, %p2682_p8 }
  0x55   :  { %p2685_p11 = pnand %p2684_p10, %p2678_p7 }
  0x57   :  { %2688 = shalt.err (!%p2685_p11)
}
  0x58   :  { %90 = dma.hbm_to_vmem [thread:$0]  %s3463_s7, 128, %s85_s21, [#allocation13], %s2795_s1, %s2795_s1, %s2796_s18  }
  0x59   :  { %s2689_s19 = scalar_lea.hbm %s3466_s10, 256 }
  0x5a   :  { %p2690_p12 = scmp.ne.s32.totalorder %s3466_s10, %s2689_s19  ;;  %p2693_p13 = scmp.lt.u32.totalorder %s2689_s19, %s3466_s10 }
  0x5c   :  { %p2695_p0 = pnand %p2693_p13, %p2690_p12 }
  0x5e   :  { %2698 = shalt.err (!%p2695_p0)
}
  0x5f   :  { %s2699_s25 = scalar_lea.vmem %s2960_s29, 256  ;;  %p2704_p2 = scmp.lt.s32.totalorder %s2960_s29, %s2960_s29 }
  0x60   :  { %p2700_p1 = scmp.ne.s32.totalorder %s2960_s29, %s2699_s25  ;;  %p2705_p3 = scmp.lt.s32.totalorder %s2699_s25, %s2699_s25 }
  0x62   :  { %p2706_p4 = por %p2705_p3, %p2704_p2 }
  0x64   :  { %p2707_p5 = pnand %p2706_p4, %p2700_p1 }
  0x66   :  { %2710 = shalt.err (!%p2707_p5)
}
  0x67   :  { %106 = dma.hbm_to_vmem [thread:$0]  %s3466_s10, 256, %s2960_s29, [#allocation16], %s2795_s1, %s2795_s1, %s2796_s18  }
  0x68   :  { %2777 = dma.done.wait [#allocation7], 64  }
  0x69   :  { %2778 = vsyncadd [#allocation7], 4294967232 }
  0x6a   :  { %2779 = dma.done.wait [#allocation10], 320  }
  0x6b   :  { %2780 = vsyncadd [#allocation10], 4294966976 }
  0x6c   :  { %2781 = dma.done.wait [#allocation13], 144  }
  0x6d   :  { %2782 = vsyncadd [#allocation13], 4294967152 }
  0x6e   :  { %2783 = dma.done.wait [#allocation16], 256  }
  0x6f   :  { %2784 = vsyncadd [#allocation16], 4294967040  ;;  %v2799_v0 = vmov 0.0   ;;  %vm2800_vm0 = vmmov 0   ;;  %v3006_v1 = vld [vmem:[%s3459_s3] sm:$0xff]   ;;  %v3012_v2 = vld [vmem:[%s3459_s3 + $0x8] sm:$0xff]  }
  0x70   :  { %2210 = vmatprep.subr.bf16.mxu0 %v2799_v0  ;;  %2214 = vmatprep.mubr.msk.bf16.mxu0 %vm2800_vm0, %v2799_v0  ;;  %v134_v3 = vld [vmem:[#allocation6] sm:$0x3]  ;;  %vm150_vm1 = vcmask 261120   ;;  %v135_v12 = vld [vmem:[#allocation9] sm:$0x3]  ;;  %vm227_vm2 = vcmask 254976  }
  0x71   :  { %2218 = vmatprep.subr.bf16.mxu1 %v2799_v0  ;;  %2222 = vmatprep.mubr.msk.bf16.mxu1 %vm2800_vm0, %v2799_v0  ;;  %v137_v4 = vpack.c.bf16 %v134_v3, %v134_v3  ;;  %v136_v5 = vld [vmem:[%s3456_s0] sm:$0x3]  ;;  %v2075_v28 = vld [vmem:[%s3456_s0 + $0x2] sm:$0x3]  ;;  %v2078_v49 = vld [vmem:[%s3456_s0 + $0x4] sm:$0x3] }
  0x72   :  { %2211 = vmatpush3.bf16.msra.mxu0 %v3006_v1  ;;  %2219 = vmatpush3.bf16.msra.mxu1 %v3006_v1  ;;  %vm1590_vm3 = vcmask 523264   ;;  %vm1725_vm6 = vcmask 64512   ;;  %vm1741_vm7 = vcmask 1043456  }
  0x73   :  { %2212 = vmatprep.subr.bf16.mxu0 %v2799_v0  ;;  %2220 = vmatprep.subr.bf16.mxu1 %v2799_v0 }
  0x76   :  { %2213 = vmatpush3.bf16.msra.mxu0 %v3012_v2  ;;  %2221 = vmatpush3.bf16.msra.mxu1 %v3012_v2 }
  0x77   :  { %2226 = vmatprep.subr.bf16.mxu0 %v2799_v0  ;;  %2234 = vmatprep.subr.bf16.mxu1 %v2799_v0 }
  0x79   :  { %2215 = vmatmul.mubr.msk.bf16.vlgmr.msra.gmra.mrb[0].mxu0 %vm150_vm1, %v137_v4 }
  0x7a   :  { %2227 = vmatpush3.bf16.msra.mxu0 %v3006_v1  ;;  %2230 = vmatprep.mubr.msk.bf16.mxu0 %vm2800_vm0, %v2799_v0 }
  0x7b   :  { %2228 = vmatprep.subr.bf16.mxu0 %v2799_v0 }
  0x7e   :  { %2229 = vmatpush3.bf16.msra.mxu0 %v3012_v2 }
  0x7f   :  { %2242 = vmatprep.subr.bf16.mxu0 %v2799_v0 }
 0x14c   :  { %v188_v6 = vpop.f32.mrb[0].mxu0 }
 0x14d   :  { %v194_v7 = vadd.f32 %v188_v6, %v136_v5  ;;  %v2216_v8 = vpop.f32.mrb[1].mxu0 }
 0x14e   :  { %v191_v9 = vpop.f32.mrb[2].mxu0 }
 0x14f   :  { %v2217_v10 = vpop.f32.mrb[3].mxu0  ;;  %2443 = vtanh.f32 %v194_v7  ;;  %v2074_v13 = vmul.f32 -1.442695, %v194_v7  ;;  %v2081_v9 = vld [vmem:[%s3456_s0 + $0x6] sm:$0x3] }
 0x151   :  { %2445 = vpow2.f32 %v2074_v13 }
 0x159   :  { %v2444_v11 = vpop.eup %2443 }
 0x15a   :  { %208 = vrot.lane.b32.xlu0 %v2444_v11, %s2795_s1 }
 0x15b   :  { %v2446_v14 = vpop.eup %2445 }
 0x15c   :  { %v198_v15 = vadd.f32 1.0, %v2446_v14 }
 0x15e   :  { %203 = vrot.lane.b32.xlu0 %v135_v12, %s2791_s30  ;;  %2447 = vrcp.f32 %v198_v15 }
 0x168   :  { %v2448_v16 = vpop.eup %2447 }
 0x1cc   :  { %v209_v17 = vpop.permute.xlu0 %208 }
 0x1cd   :  { %v211_v18 = vmul.f32 %v2448_v16, %v209_v17 }
 0x1cf   :  { %213 = vrot.lane.b32.xlu1 %v211_v18, %s2791_s30 }
 0x1d0   :  { %v204_v19 = vpop.permute.xlu0 %203 }
 0x1d1   :  { %v206_v20 = vmul.f32 %v2448_v16, %v204_v19 }
 0x241   :  { %v214_v21 = vpop.permute.xlu1 %213 }
 0x242   :  { %v216_v22 = vadd.f32 %v214_v21, %v206_v20 }
 0x244   :  { %2449 = vtanh.f32 %v216_v22 }
 0x24e   :  { %v2450_v23 = vpop.eup %2449 }
 0x24f   :  { %219 = vrot.lane.b32.xlu1 %v2450_v23, %s2795_s1 }
 0x2c1   :  { %v220_v24 = vpop.permute.xlu1 %219 }
 0x2c2   :  { %v3035_v25 = vmul.f32 %v2448_v16, %v220_v24 }
 0x2c4   :  { %v231_v26 = vpack.c.bf16 %v3035_v25, %v3035_v25 }
 0x2c6   :  { %233 = vrot.lane.b32.xlu0 %v231_v26, %s2791_s30 }
 0x338   :  { %v234_v27 = vpop.permute.xlu0 %233 }
 0x339   :  { %2223 = vmatmul.mubr.msk.bf16.vlgmr.msra.gmra.mrb[0].mxu1 %vm150_vm1, %v234_v27 }
 0x33a   :  { %2235 = vmatpush3.bf16.msra.mxu1 %v3006_v1  ;;  %2238 = vmatprep.mubr.msk.bf16.mxu1 %vm2800_vm0, %v2799_v0 }
 0x33b   :  { %2236 = vmatprep.subr.bf16.mxu1 %v2799_v0 }
 0x33e   :  { %2237 = vmatpush3.bf16.msra.mxu1 %v3012_v2 }
 0x33f   :  { %2250 = vmatprep.subr.bf16.mxu1 %v2799_v0 }
 0x40c   :  { %v272_v29 = vpop.f32.mrb[0].mxu1 }
 0x40d   :  { %v278_v30 = vadd.f32 %v2075_v28, %v272_v29  ;;  %v2224_v31 = vpop.f32.mrb[1].mxu1 }
 0x40e   :  { %v275_v32 = vpop.f32.mrb[2].mxu1  ;;  %v2084_v31 = vld [vmem:[%s3456_s0 + $0x8] sm:$0x3] }
 0x40f   :  { %2451 = vtanh.f32 %v278_v30  ;;  %v2225_v33 = vpop.f32.mrb[3].mxu1  ;;  %v2077_v35 = vmul.f32 -1.442695, %v278_v30 }
 0x411   :  { %2453 = vpow2.f32 %v2077_v35 }
 0x419   :  { %v2452_v34 = vpop.eup %2451 }
 0x41a   :  { %288 = vrot.lane.b32.xlu1 %v2452_v34, %s2795_s1 }
 0x41b   :  { %v2454_v36 = vpop.eup %2453 }
 0x41c   :  { %v282_v37 = vadd.f32 1.0, %v2454_v36 }
 0x41e   :  { %2455 = vrcp.f32 %v282_v37 }
 0x428   :  { %v2456_v38 = vpop.eup %2455 }
 0x429   :  { %v286_v41 = vmul.f32 %v2456_v38, %v216_v22 }
 0x48c   :  { %v289_v39 = vpop.permute.xlu1 %288 }
 0x48d   :  { %v291_v40 = vmul.f32 %v2456_v38, %v289_v39 }
 0x48f   :  { %293 = vrot.lane.b32.xlu0 %v291_v40, %s2791_s30 }
 0x501   :  { %v294_v42 = vpop.permute.xlu0 %293 }
 0x502   :  { %v296_v43 = vadd.f32 %v294_v42, %v286_v41 }
 0x504   :  { %2457 = vtanh.f32 %v296_v43 }
 0x50e   :  { %v2458_v44 = vpop.eup %2457 }
 0x50f   :  { %299 = vrot.lane.b32.xlu1 %v2458_v44, %s2795_s1 }
 0x581   :  { %v300_v45 = vpop.permute.xlu1 %299 }
 0x582   :  { %v3053_v46 = vmul.f32 %v2456_v38, %v300_v45 }
 0x584   :  { %v311_v47 = vpack.c.bf16 %v3053_v46, %v3053_v46 }
 0x586   :  { %313 = vrot.lane.b32.xlu0 %v311_v47, %s2791_s30 }
 0x5f8   :  { %v314_v48 = vpop.permute.xlu0 %313 }
 0x5f9   :  { %2231 = vmatmul.mubr.msk.bf16.vlgmr.msra.gmra.mrb[4].mxu0 %vm150_vm1, %v314_v48 }
 0x5fa   :  { %2243 = vmatpush3.bf16.msra.mxu0 %v3006_v1  ;;  %2246 = vmatprep.mubr.msk.bf16.mxu0 %vm2800_vm0, %v2799_v0 }
 0x5fb   :  { %2244 = vmatprep.subr.bf16.mxu0 %v2799_v0 }
 0x5fe   :  { %2245 = vmatpush3.bf16.msra.mxu0 %v3012_v2 }
 0x5ff   :  { %2258 = vmatprep.subr.bf16.mxu0 %v2799_v0 }
 0x6cc   :  { %v352_v50 = vpop.f32.mrb[4].mxu0 }
 0x6cd   :  { %v358_v51 = vadd.f32 %v2078_v49, %v352_v50  ;;  %v2232_v52 = vpop.f32.mrb[5].mxu0 }
 0x6ce   :  { %v355_v53 = vpop.f32.mrb[6].mxu0 }
 0x6cf   :  { %2459 = vtanh.f32 %v358_v51  ;;  %v2233_v54 = vpop.f32.mrb[7].mxu0  ;;  %v2080_v56 = vmul.f32 -1.442695, %v358_v51  ;;  %v2087_v53 = vld [vmem:[%s3456_s0 + $0xa] sm:$0x3] }
 0x6d1   :  { %2461 = vpow2.f32 %v2080_v56 }
 0x6d9   :  { %v2460_v55 = vpop.eup %2459 }
 0x6da   :  { %368 = vrot.lane.b32.xlu1 %v2460_v55, %s2795_s1 }
 0x6db   :  { %v2462_v57 = vpop.eup %2461 }
 0x6dc   :  { %v362_v58 = vadd.f32 1.0, %v2462_v57 }
 0x6de   :  { %2463 = vrcp.f32 %v362_v58 }
 0x6e8   :  { %v2464_v59 = vpop.eup %2463 }
 0x6e9   :  { %v366_v62 = vmul.f32 %v2464_v59, %v296_v43 }
 0x74c   :  { %v369_v60 = vpop.permute.xlu1 %368 }
 0x74d   :  { %v371_v61 = vmul.f32 %v2464_v59, %v369_v60 }
 0x74f   :  { %373 = vrot.lane.b32.xlu0 %v371_v61, %s2791_s30 }
 0x7c1   :  { %v374_v63 = vpop.permute.xlu0 %373 }
 0x7c2   :  { %v376_v3 = vadd.f32 %v374_v63, %v366_v62 }
 0x7c4   :  { %2465 = vtanh.f32 %v376_v3 }
 0x7ce   :  { %v2466_v4 = vpop.eup %2465 }
 0x7cf   :  { %379 = vrot.lane.b32.xlu1 %v2466_v4, %s2795_s1 }
 0x841   :  { %v380_v5 = vpop.permute.xlu1 %379 }
 0x842   :  { %v3071_v6 = vmul.f32 %v2464_v59, %v380_v5 }
 0x844   :  { %v391_v7 = vpack.c.bf16 %v3071_v6, %v3071_v6 }
 0x846   :  { %393 = vrot.lane.b32.xlu0 %v391_v7, %s2791_s30 }
 0x8b8   :  { %v394_v8 = vpop.permute.xlu0 %393 }
 0x8b9   :  { %2239 = vmatmul.mubr.msk.bf16.vlgmr.msra.gmra.mrb[4].mxu1 %vm150_vm1, %v394_v8 }
 0x8ba   :  { %2251 = vmatpush3.bf16.msra.mxu1 %v3006_v1  ;;  %2254 = vmatprep.mubr.msk.bf16.mxu1 %vm2800_vm0, %v2799_v0 }
 0x8bb   :  { %2252 = vmatprep.subr.bf16.mxu1 %v2799_v0 }
 0x8be   :  { %2253 = vmatpush3.bf16.msra.mxu1 %v3012_v2 }
 0x8bf   :  { %2266 = vmatprep.subr.bf16.mxu1 %v2799_v0 }
 0x98c   :  { %v432_v10 = vpop.f32.mrb[4].mxu1 }
 0x98d   :  { %v438_v11 = vadd.f32 %v2081_v9, %v432_v10  ;;  %v2240_v12 = vpop.f32.mrb[5].mxu1 }
 0x98e   :  { %v435_v13 = vpop.f32.mrb[6].mxu1  ;;  %v2090_v12 = vld [vmem:[%s3456_s0 + $0xc] sm:$0x3] }
 0x98f   :  { %2467 = vtanh.f32 %v438_v11  ;;  %v2241_v14 = vpop.f32.mrb[7].mxu1  ;;  %v2083_v16 = vmul.f32 -1.442695, %v438_v11 }
 0x991   :  { %2469 = vpow2.f32 %v2083_v16 }
 0x999   :  { %v2468_v15 = vpop.eup %2467 }
 0x99a   :  { %448 = vrot.lane.b32.xlu1 %v2468_v15, %s2795_s1 }
 0x99b   :  { %v2470_v17 = vpop.eup %2469 }
 0x99c   :  { %v442_v18 = vadd.f32 1.0, %v2470_v17 }
 0x99e   :  { %2471 = vrcp.f32 %v442_v18 }
 0x9a8   :  { %v2472_v19 = vpop.eup %2471 }
 0x9a9   :  { %v446_v22 = vmul.f32 %v2472_v19, %v376_v3 }
 0xa0c   :  { %v449_v20 = vpop.permute.xlu1 %448 }
 0xa0d   :  { %v451_v21 = vmul.f32 %v2472_v19, %v449_v20 }
 0xa0f   :  { %453 = vrot.lane.b32.xlu0 %v451_v21, %s2791_s30 }
 0xa81   :  { %v454_v23 = vpop.permute.xlu0 %453 }
 0xa82   :  { %v456_v24 = vadd.f32 %v454_v23, %v446_v22 }
 0xa84   :  { %2473 = vtanh.f32 %v456_v24 }
 0xa8e   :  { %v2474_v26 = vpop.eup %2473 }
 0xa8f   :  { %459 = vrot.lane.b32.xlu1 %v2474_v26, %s2795_s1 }
 0xb01   :  { %v460_v27 = vpop.permute.xlu1 %459 }
 0xb02   :  { %v3089_v28 = vmul.f32 %v2472_v19, %v460_v27 }
 0xb04   :  { %v471_v29 = vpack.c.bf16 %v3089_v28, %v3089_v28 }
 0xb06   :  { %473 = vrot.lane.b32.xlu0 %v471_v29, %s2791_s30 }
 0xb78   :  { %v474_v30 = vpop.permute.xlu0 %473 }
 0xb79   :  { %2247 = vmatmul.mubr.msk.bf16.vlgmr.msra.gmra.mrb[8].mxu0 %vm150_vm1, %v474_v30 }
 0xb7a   :  { %2259 = vmatpush3.bf16.msra.mxu0 %v3006_v1  ;;  %2262 = vmatprep.mubr.msk.bf16.mxu0 %vm2800_vm0, %v2799_v0 }
 0xb7b   :  { %2260 = vmatprep.subr.bf16.mxu0 %v2799_v0 }
 0xb7e   :  { %2261 = vmatpush3.bf16.msra.mxu0 %v3012_v2 }
 0xb7f   :  { %2274 = vmatprep.subr.bf16.mxu0 %v2799_v0 }
 0xc4c   :  { %v512_v32 = vpop.f32.mrb[8].mxu0 }
 0xc4d   :  { %v518_v33 = vadd.f32 %v2084_v31, %v512_v32  ;;  %v2248_v34 = vpop.f32.mrb[9].mxu0 }
 0xc4e   :  { %v515_v35 = vpop.f32.mrb[10].mxu0 }
 0xc4f   :  { %2475 = vtanh.f32 %v518_v33  ;;  %v2249_v36 = vpop.f32.mrb[11].mxu0  ;;  %v2086_v38 = vmul.f32 -1.442695, %v518_v33  ;;  %v2093_v35 = vld [vmem:[%s3456_s0 + $0xe] sm:$0x3] }
 0xc51   :  { %2477 = vpow2.f32 %v2086_v38 }
 0xc59   :  { %v2476_v37 = vpop.eup %2475 }
 0xc5a   :  { %528 = vrot.lane.b32.xlu1 %v2476_v37, %s2795_s1 }
 0xc5b   :  { %v2478_v39 = vpop.eup %2477 }
 0xc5c   :  { %v522_v40 = vadd.f32 1.0, %v2478_v39 }
 0xc5e   :  { %2479 = vrcp.f32 %v522_v40 }
 0xc68   :  { %v2480_v41 = vpop.eup %2479 }
 0xc69   :  { %v526_v44 = vmul.f32 %v2480_v41, %v456_v24 }
 0xccc   :  { %v529_v42 = vpop.permute.xlu1 %528 }
 0xccd   :  { %v531_v43 = vmul.f32 %v2480_v41, %v529_v42 }
 0xccf   :  { %533 = vrot.lane.b32.xlu0 %v531_v43, %s2791_s30 }
 0xd41   :  { %v534_v45 = vpop.permute.xlu0 %533 }
 0xd42   :  { %v536_v47 = vadd.f32 %v534_v45, %v526_v44 }
 0xd44   :  { %2481 = vtanh.f32 %v536_v47 }
 0xd4e   :  { %v2482_v48 = vpop.eup %2481 }
 0xd4f   :  { %539 = vrot.lane.b32.xlu1 %v2482_v48, %s2795_s1 }
 0xdc1   :  { %v540_v49 = vpop.permute.xlu1 %539 }
 0xdc2   :  { %v3107_v50 = vmul.f32 %v2480_v41, %v540_v49 }
 0xdc4   :  { %v551_v51 = vpack.c.bf16 %v3107_v50, %v3107_v50 }
 0xdc6   :  { %553 = vrot.lane.b32.xlu0 %v551_v51, %s2791_s30 }
 0xe38   :  { %v554_v52 = vpop.permute.xlu0 %553 }
 0xe39   :  { %2255 = vmatmul.mubr.msk.bf16.vlgmr.msra.gmra.mrb[8].mxu1 %vm150_vm1, %v554_v52 }
 0xe3a   :  { %2267 = vmatpush3.bf16.msra.mxu1 %v3006_v1  ;;  %2270 = vmatprep.mubr.msk.bf16.mxu1 %vm2800_vm0, %v2799_v0 }
 0xe3b   :  { %2268 = vmatprep.subr.bf16.mxu1 %v2799_v0 }
 0xe3e   :  { %2269 = vmatpush3.bf16.msra.mxu1 %v3012_v2 }
 0xe3f   :  { %2282 = vmatprep.subr.bf16.mxu1 %v2799_v0 }
 0xf0c   :  { %v592_v54 = vpop.f32.mrb[8].mxu1 }
 0xf0d   :  { %v598_v55 = vadd.f32 %v2087_v53, %v592_v54  ;;  %v2256_v56 = vpop.f32.mrb[9].mxu1 }
 0xf0e   :  { %v595_v57 = vpop.f32.mrb[10].mxu1  ;;  %v2432_v56 = vld [vmem:[%s3460_s4 + $0x8] sm:$0xff]  }
 0xf0f   :  { %2483 = vtanh.f32 %v598_v55  ;;  %v2257_v58 = vpop.f32.mrb[11].mxu1  ;;  %v2089_v59 = vmul.f32 -1.442695, %v598_v55  ;;  %v2431_v55 = vld [vmem:[%s3460_s4] sm:$0xff]   ;;  %v3180_v57 = vld [vmem:[#allocation11 + $0x8] sm:$0xff]  }
 0xf10   :  { %v872_v58 = vld [vmem:[#allocation6 + $0x2] sm:$0x3] }
 0xf11   :  { %2485 = vpow2.f32 %v2089_v59  ;;  %v876_v59 = vpack.c.bf16 %v872_v58, %v872_v58 }
 0xf19   :  { %v2484_v1 = vpop.eup %2483 }
 0xf1a   :  { %608 = vrot.lane.b32.xlu1 %v2484_v1, %s2795_s1 }
 0xf1b   :  { %v2486_v60 = vpop.eup %2485 }
 0xf1c   :  { %v602_v61 = vadd.f32 1.0, %v2486_v60 }
 0xf1e   :  { %2487 = vrcp.f32 %v602_v61  ;;  %v874_v61 = vld [vmem:[#allocation9 + $0x2] sm:$0x3] }
 0xf28   :  { %v2488_v2 = vpop.eup %2487 }
 0xf29   :  { %v606_v3 = vmul.f32 %v2488_v2, %v536_v47 }
 0xf8c   :  { %v609_v62 = vpop.permute.xlu1 %608 }
 0xf8d   :  { %v611_v63 = vmul.f32 %v2488_v2, %v609_v62 }
 0xf8f   :  { %613 = vrot.lane.b32.xlu0 %v611_v63, %s2791_s30 }
0x1001   :  { %v614_v4 = vpop.permute.xlu0 %613 }
0x1002   :  { %v616_v5 = vadd.f32 %v614_v4, %v606_v3 }
0x1004   :  { %2489 = vtanh.f32 %v616_v5 }
0x100e   :  { %v2490_v7 = vpop.eup %2489 }
0x100f   :  { %619 = vrot.lane.b32.xlu1 %v2490_v7, %s2795_s1 }
0x1081   :  { %v620_v8 = vpop.permute.xlu1 %619 }
0x1082   :  { %v3125_v9 = vmul.f32 %v2488_v2, %v620_v8 }
0x1084   :  { %v631_v10 = vpack.c.bf16 %v3125_v9, %v3125_v9 }
0x1086   :  { %633 = vrot.lane.b32.xlu0 %v631_v10, %s2791_s30 }
0x10f8   :  { %v634_v11 = vpop.permute.xlu0 %633 }
0x10f9   :  { %2263 = vmatmul.mubr.msk.bf16.vlgmr.msra.gmra.mrb[12].mxu0 %vm150_vm1, %v634_v11  ;;  %v2096_v11 = vld [vmem:[#allocation12] ss:$0 sm:$0xff] }
0x10fa   :  { %2278 = vmatprep.mubr.msk.bf16.mxu0 %vm2800_vm0, %v2799_v0  ;;  %2275 = vmatpush3.bf16.msra.mxu0 %v2431_v55 }
0x10fb   :  { %2276 = vmatprep.subr.bf16.mxu0 %v2799_v0 }
0x10fe   :  { %2277 = vmatpush3.bf16.msra.mxu0 %v2432_v56 }
0x10ff   :  { %2290 = vmatprep.subr.bf16.mxu0 %v2799_v0 }
0x11cc   :  { %v672_v13 = vpop.f32.mrb[12].mxu0 }
0x11cd   :  { %v678_v14 = vadd.f32 %v2090_v12, %v672_v13  ;;  %v2264_v15 = vpop.f32.mrb[13].mxu0 }
0x11ce   :  { %v675_v16 = vpop.f32.mrb[14].mxu0 }
0x11cf   :  { %2491 = vtanh.f32 %v678_v14  ;;  %v2265_v17 = vpop.f32.mrb[15].mxu0  ;;  %v2092_v19 = vmul.f32 -1.442695, %v678_v14 }
0x11d1   :  { %2493 = vpow2.f32 %v2092_v19 }
0x11d9   :  { %v2492_v18 = vpop.eup %2491 }
0x11da   :  { %688 = vrot.lane.b32.xlu1 %v2492_v18, %s2795_s1 }
0x11db   :  { %v2494_v20 = vpop.eup %2493 }
0x11dc   :  { %v682_v21 = vadd.f32 1.0, %v2494_v20 }
0x11de   :  { %2495 = vrcp.f32 %v682_v21 }
0x11e8   :  { %v2496_v22 = vpop.eup %2495 }
0x11e9   :  { %v686_v26 = vmul.f32 %v2496_v22, %v616_v5 }
0x124c   :  { %v689_v23 = vpop.permute.xlu1 %688 }
0x124d   :  { %v691_v24 = vmul.f32 %v2496_v22, %v689_v23 }
0x124f   :  { %693 = vrot.lane.b32.xlu0 %v691_v24, %s2791_s30 }
0x12c1   :  { %v694_v27 = vpop.permute.xlu0 %693 }
0x12c2   :  { %v696_v29 = vadd.f32 %v694_v27, %v686_v26 }
0x12c4   :  { %2497 = vtanh.f32 %v696_v29 }
0x12ce   :  { %v2498_v30 = vpop.eup %2497 }
0x12cf   :  { %699 = vrot.lane.b32.xlu1 %v2498_v30, %s2795_s1 }
0x1341   :  { %v700_v31 = vpop.permute.xlu1 %699 }
0x1342   :  { %v702_v32 = vmul.f32 %v2496_v22, %v700_v31 }
0x1344   :  { %v711_v33 = vpack.c.bf16 %v702_v32, %v702_v32 }
0x1346   :  { %713 = vrot.lane.b32.xlu0 %v711_v33, %s2791_s30 }
0x13b8   :  { %v714_v34 = vpop.permute.xlu0 %713 }
0x13b9   :  { %2271 = vmatmul.mubr.msk.bf16.vlgmr.msra.gmra.mrb[12].mxu1 %vm150_vm1, %v714_v34 }
0x13ba   :  { %2286 = vmatprep.mubr.msk.bf16.mxu1 %vm2800_vm0, %v2799_v0 }
0x148c   :  { %v752_v36 = vpop.f32.mrb[12].mxu1 }
0x148d   :  { %v758_v37 = vadd.f32 %v2093_v35, %v752_v36  ;;  %v2272_v38 = vpop.f32.mrb[13].mxu1 }
0x148e   :  { %v755_v39 = vpop.f32.mrb[14].mxu1 }
0x148f   :  { %2499 = vtanh.f32 %v758_v37  ;;  %v2273_v40 = vpop.f32.mrb[15].mxu1  ;;  %v2095_v42 = vmul.f32 -1.442695, %v758_v37 }
0x1491   :  { %2501 = vpow2.f32 %v2095_v42 }
0x1499   :  { %v2500_v41 = vpop.eup %2499 }
0x149a   :  { %768 = vrot.lane.b32.xlu1 %v2500_v41, %s2795_s1 }
0x149b   :  { %v2502_v43 = vpop.eup %2501 }
0x149c   :  { %v762_v44 = vadd.f32 1.0, %v2502_v43 }
0x149e   :  { %2503 = vrcp.f32 %v762_v44 }
0x14a8   :  { %v2504_v45 = vpop.eup %2503 }
0x14a9   :  { %v766_v49 = vmul.f32 %v2504_v45, %v696_v29 }
0x150c   :  { %v769_v47 = vpop.permute.xlu1 %768 }
0x150d   :  { %v771_v48 = vmul.f32 %v2504_v45, %v769_v47 }
0x150f   :  { %773 = vrot.lane.b32.xlu0 %v771_v48, %s2791_s30 }
0x1513   :  { %224 = vrot.lane.b32.xlu0 %v3035_v25, %s2791_s30 }
0x1517   :  { %384 = vrot.lane.b32.xlu0 %v3071_v6, %s2791_s30 }
0x151b   :  { %544 = vrot.lane.b32.xlu0 %v3107_v50, %s2791_s30 }
0x151f   :  { %704 = vrot.lane.b32.xlu0 %v702_v32, %s2791_s30 }
0x1581   :  { %v774_v51 = vpop.permute.xlu0 %773 }
0x1582   :  { %v3155_v52 = vadd.f32 %v774_v51, %v766_v49 }
0x1584   :  { %2505 = vtanh.f32 %v3155_v52 }
0x1585   :  { %v225_v53 = vpop.permute.xlu0 %224 }
0x1586   :  { %228 = vst.msk [vmem:[#allocation2] sm:$0x3] %vm227_vm2, %v225_v53 }
0x1589   :  { %v385_v54 = vpop.permute.xlu0 %384 }
0x158a   :  { %388 = vst.msk [vmem:[#allocation2 + $0x4] sm:$0x3] %vm227_vm2, %v385_v54 }
0x158d   :  { %v545_v25 = vpop.permute.xlu0 %544 }
0x158e   :  { %v2506_v6 = vpop.eup %2505  ;;  %548 = vst.msk [vmem:[#allocation2 + $0x8] sm:$0x3] %vm227_vm2, %v545_v25 }
0x158f   :  { %779 = vrot.lane.b32.xlu1 %v2506_v6, %s2795_s1 }
0x1591   :  { %v705_v50 = vpop.permute.xlu0 %704 }
0x1592   :  { %708 = vst.msk [vmem:[#allocation2 + $0xc] sm:$0x3] %vm227_vm2, %v705_v50 }
0x1593   :  { %304 = vrot.lane.b32.xlu1 %v3053_v46, %s2791_s30  ;;  %v3177_v46 = vld [vmem:[#allocation11] sm:$0xff]  }
0x1594   :  { %2283 = vmatpush3.bf16.msra.mxu1 %v3177_v46 }
0x1595   :  { %2284 = vmatprep.subr.bf16.mxu1 %v2799_v0 }
0x1597   :  { %464 = vrot.lane.b32.xlu1 %v3089_v28, %s2791_s30 }
0x1598   :  { %2285 = vmatpush3.bf16.msra.mxu1 %v3180_v57 }
0x1599   :  { %2298 = vmatprep.subr.bf16.mxu1 %v2799_v0 }
0x159b   :  { %624 = vrot.lane.b32.xlu1 %v3125_v9, %s2791_s30  ;;  %2287 = vmatmul.mubr.msk.bf16.vlgmr.msra.gmra.mrb[16].mxu1 %vm150_vm1, %v876_v59 }
0x159c   :  { %2299 = vmatpush3.bf16.msra.mxu1 %v3177_v46  ;;  %2302 = vmatprep.mubr.msk.bf16.mxu1 %vm2800_vm0, %v2799_v0 }
0x159d   :  { %2300 = vmatprep.subr.bf16.mxu1 %v2799_v0 }
0x15a0   :  { %2301 = vmatpush3.bf16.msra.mxu1 %v3180_v57 }
0x15a1   :  { %2314 = vmatprep.subr.bf16.mxu1 %v2799_v0 }
0x1601   :  { %v780_v28 = vpop.permute.xlu1 %779 }
0x1602   :  { %v782_v1 = vmul.f32 %v2504_v45, %v780_v28 }
0x1604   :  { %784 = vrot.lane.b32.xlu1 %v782_v1, %s2791_s30 }
0x1605   :  { %v305_v60 = vpop.permute.xlu1 %304 }
0x1606   :  { %308 = vst.msk [vmem:[#allocation2 + $0x2] sm:$0x3] %vm227_vm2, %v305_v60 }
0x1608   :  { %941 = vrot.lane.b32.xlu1 %v874_v61, %s2791_s30 }
0x1609   :  { %v465_v2 = vpop.permute.xlu1 %464 }
0x160a   :  { %468 = vst.msk [vmem:[#allocation2 + $0x6] sm:$0x3] %vm227_vm2, %v465_v2 }
0x160d   :  { %v625_v62 = vpop.permute.xlu1 %624 }
0x160e   :  { %628 = vst.msk [vmem:[#allocation2 + $0xa] sm:$0x3] %vm227_vm2, %v625_v62 }
0x1611   :  { %v795_v3 = vld [vmem:[#allocation2] sm:$0xff] }
0x166e   :  { %v926_v7 = vpop.f32.mrb[16].mxu1 }
0x166f   :  { %v2288_v8 = vpop.f32.mrb[17].mxu1 }
0x1670   :  { %v929_v9 = vpop.f32.mrb[18].mxu1 }
0x1671   :  { %v2289_v10 = vpop.f32.mrb[19].mxu1 }
0x1676   :  { %v785_v63 = vpop.permute.xlu1 %784 }
0x1677   :  { %788 = vst.msk [vmem:[#allocation2 + $0xe] sm:$0x3] %vm227_vm2, %v785_v63  ;;  %789 = vst.msk [vmem:[#allocation18] sm:$0x3] %vm227_vm2, %v785_v63 }
0x167a   :  { %v942_v29 = vpop.permute.xlu1 %941 }
0x167e   :  { %v796_v4 = vld [vmem:[#allocation2 + $0x8] sm:$0xff] }
0x167f   :  { %v797_v5 = vpack.c.bf16 %v796_v4, %v795_v3 }
0x1681   :  { %2279 = vmatmul.mubr.msk.bf16.vlgmr.msra.gmra.mrb[16].mxu0 %vm150_vm1, %v797_v5 }
0x1682   :  { %2291 = vmatpush3.bf16.msra.mxu0 %v3177_v46  ;;  %2294 = vmatprep.mubr.msk.bf16.mxu0 %vm2800_vm0, %v2799_v0 }
0x1683   :  { %2292 = vmatprep.subr.bf16.mxu0 %v2799_v0 }
0x1686   :  { %2293 = vmatpush3.bf16.msra.mxu0 %v3180_v57 }
0x1687   :  { %2306 = vmatprep.subr.bf16.mxu0 %v2799_v0 }
0x1754   :  { %v858_v12 = vpop.f32.mrb[16].mxu0 }
0x1755   :  { %v859_v13 = vadd.f32 %v2096_v11, %v858_v12  ;;  %v2280_v14 = vpop.f32.mrb[17].mxu0 }
0x1756   :  { %v861_v15 = vpop.f32.mrb[18].mxu0 }
0x1757   :  { %865 = vst [vmem:[#allocation3] sm:$0xff] %v859_v13  ;;  %v862_v16 = vadd.f32 %v2096_v11, %v861_v15  ;;  %v2281_v17 = vpop.f32.mrb[19].mxu0 }
0x1759   :  { %866 = vst [vmem:[#allocation3 + $0x8] sm:$0xff] %v862_v16 }
0x175e   :  { %v875_v18 = vld [vmem:[#allocation3] sm:$0x3]  ;;  %v967_v38 = vld [vmem:[#allocation3 + $0x2] sm:$0x3]  ;;  %v1046_v1 = vld [vmem:[#allocation3 + $0x4] sm:$0x3] }
0x175f   :  { %v932_v19 = vadd.f32 %v926_v7, %v875_v18  ;;  %v1125_v18 = vld [vmem:[#allocation3 + $0x6] sm:$0x3] }
0x1761   :  { %2507 = vtanh.f32 %v932_v19  ;;  %v2103_v21 = vmul.f32 -1.442695, %v932_v19 }
0x1763   :  { %2509 = vpow2.f32 %v2103_v21 }
0x176b   :  { %v2508_v20 = vpop.eup %2507 }
0x176c   :  { %946 = vrot.lane.b32.xlu0 %v2508_v20, %s2795_s1 }
0x176d   :  { %v2510_v22 = vpop.eup %2509 }
0x176e   :  { %v936_v23 = vadd.f32 1.0, %v2510_v22 }
0x1770   :  { %2511 = vrcp.f32 %v936_v23 }
0x177a   :  { %v2512_v24 = vpop.eup %2511 }
0x177b   :  { %v944_v30 = vmul.f32 %v2512_v24, %v942_v29 }
0x17de   :  { %v947_v26 = vpop.permute.xlu0 %946 }
0x17df   :  { %v949_v27 = vmul.f32 %v2512_v24, %v947_v26 }
0x17e1   :  { %951 = vrot.lane.b32.xlu0 %v949_v27, %s2791_s30 }
0x1853   :  { %v952_v31 = vpop.permute.xlu0 %951 }
0x1854   :  { %v954_v32 = vadd.f32 %v952_v31, %v944_v30 }
0x1856   :  { %2513 = vtanh.f32 %v954_v32 }
0x1860   :  { %v2514_v33 = vpop.eup %2513 }
0x1861   :  { %957 = vrot.lane.b32.xlu1 %v2514_v33, %s2795_s1 }
0x18d3   :  { %v958_v34 = vpop.permute.xlu1 %957 }
0x18d4   :  { %v3209_v35 = vmul.f32 %v2512_v24, %v958_v34 }
0x18d6   :  { %v968_v36 = vpack.c.bf16 %v3209_v35, %v3209_v35 }
0x18d8   :  { %970 = vrot.lane.b32.xlu0 %v968_v36, %s2791_s30 }
0x194a   :  { %v971_v37 = vpop.permute.xlu0 %970 }
0x194b   :  { %2295 = vmatmul.mubr.msk.bf16.vlgmr.msra.gmra.mrb[20].mxu0 %vm150_vm1, %v971_v37 }
0x194c   :  { %2307 = vmatpush3.bf16.msra.mxu0 %v3177_v46  ;;  %2310 = vmatprep.mubr.msk.bf16.mxu0 %vm2800_vm0, %v2799_v0 }
0x194d   :  { %2308 = vmatprep.subr.bf16.mxu0 %v2799_v0 }
0x1950   :  { %2309 = vmatpush3.bf16.msra.mxu0 %v3180_v57 }
0x1951   :  { %2322 = vmatprep.subr.bf16.mxu0 %v2799_v0 }
0x1a1e   :  { %v1009_v39 = vpop.f32.mrb[20].mxu0 }
0x1a1f   :  { %v1015_v40 = vadd.f32 %v1009_v39, %v967_v38  ;;  %v2296_v41 = vpop.f32.mrb[21].mxu0 }
0x1a20   :  { %v1012_v42 = vpop.f32.mrb[22].mxu0 }
0x1a21   :  { %2515 = vtanh.f32 %v1015_v40  ;;  %v2297_v43 = vpop.f32.mrb[23].mxu0  ;;  %v2105_v45 = vmul.f32 -1.442695, %v1015_v40  ;;  %v1204_v42 = vld [vmem:[#allocation3 + $0x8] sm:$0x3] }
0x1a23   :  { %2517 = vpow2.f32 %v2105_v45 }
0x1a2b   :  { %v2516_v44 = vpop.eup %2515 }
0x1a2c   :  { %1025 = vrot.lane.b32.xlu1 %v2516_v44, %s2795_s1 }
0x1a2d   :  { %v2518_v47 = vpop.eup %2517 }
0x1a2e   :  { %v1019_v48 = vadd.f32 1.0, %v2518_v47 }
0x1a30   :  { %2519 = vrcp.f32 %v1019_v48 }
0x1a3a   :  { %v2520_v49 = vpop.eup %2519 }
0x1a3b   :  { %v1023_v54 = vmul.f32 %v2520_v49, %v954_v32 }
0x1a9e   :  { %v1026_v51 = vpop.permute.xlu1 %1025 }
0x1a9f   :  { %v1028_v53 = vmul.f32 %v2520_v49, %v1026_v51 }
0x1aa1   :  { %1030 = vrot.lane.b32.xlu0 %v1028_v53, %s2791_s30 }
0x1b13   :  { %v1031_v25 = vpop.permute.xlu0 %1030 }
0x1b14   :  { %v1033_v6 = vadd.f32 %v1031_v25, %v1023_v54 }
0x1b16   :  { %2521 = vtanh.f32 %v1033_v6 }
0x1b20   :  { %v2522_v50 = vpop.eup %2521 }
0x1b21   :  { %1036 = vrot.lane.b32.xlu1 %v2522_v50, %s2795_s1 }
0x1b93   :  { %v1037_v55 = vpop.permute.xlu1 %1036 }
0x1b94   :  { %v3224_v56 = vmul.f32 %v2520_v49, %v1037_v55 }
0x1b96   :  { %v1047_v28 = vpack.c.bf16 %v3224_v56, %v3224_v56 }
0x1b98   :  { %1049 = vrot.lane.b32.xlu0 %v1047_v28, %s2791_s30 }
0x1c0a   :  { %v1050_v58 = vpop.permute.xlu0 %1049 }
0x1c0b   :  { %2303 = vmatmul.mubr.msk.bf16.vlgmr.msra.gmra.mrb[20].mxu1 %vm150_vm1, %v1050_v58 }
0x1c0c   :  { %2315 = vmatpush3.bf16.msra.mxu1 %v3177_v46  ;;  %2318 = vmatprep.mubr.msk.bf16.mxu1 %vm2800_vm0, %v2799_v0 }
0x1c0d   :  { %2316 = vmatprep.subr.bf16.mxu1 %v2799_v0 }
0x1c10   :  { %2317 = vmatpush3.bf16.msra.mxu1 %v3180_v57 }
0x1c11   :  { %2330 = vmatprep.subr.bf16.mxu1 %v2799_v0 }
0x1cde   :  { %v1088_v59 = vpop.f32.mrb[20].mxu1 }
0x1cdf   :  { %v1094_v60 = vadd.f32 %v1088_v59, %v1046_v1  ;;  %v2304_v61 = vpop.f32.mrb[21].mxu1 }
0x1ce0   :  { %v1091_v2 = vpop.f32.mrb[22].mxu1 }
0x1ce1   :  { %2523 = vtanh.f32 %v1094_v60  ;;  %v2305_v62 = vpop.f32.mrb[23].mxu1  ;;  %v2107_v3 = vmul.f32 -1.442695, %v1094_v60 }
0x1ce2   :  { %v1283_v62 = vld [vmem:[#allocation3 + $0xa] sm:$0x3] }
0x1ce3   :  { %2525 = vpow2.f32 %v2107_v3 }
0x1ceb   :  { %v2524_v63 = vpop.eup %2523 }
0x1cec   :  { %1104 = vrot.lane.b32.xlu1 %v2524_v63, %s2795_s1 }
0x1ced   :  { %v2526_v4 = vpop.eup %2525 }
0x1cee   :  { %v1098_v5 = vadd.f32 1.0, %v2526_v4 }
0x1cf0   :  { %2527 = vrcp.f32 %v1098_v5 }
0x1cfa   :  { %v2528_v7 = vpop.eup %2527 }
0x1cfb   :  { %v1102_v10 = vmul.f32 %v2528_v7, %v1033_v6 }
0x1d5e   :  { %v1105_v8 = vpop.permute.xlu1 %1104 }
0x1d5f   :  { %v1107_v9 = vmul.f32 %v2528_v7, %v1105_v8 }
0x1d61   :  { %1109 = vrot.lane.b32.xlu0 %v1107_v9, %s2791_s30 }
0x1dd3   :  { %v1110_v11 = vpop.permute.xlu0 %1109 }
0x1dd4   :  { %v1112_v12 = vadd.f32 %v1110_v11, %v1102_v10 }
0x1dd6   :  { %2529 = vtanh.f32 %v1112_v12 }
0x1de0   :  { %v2530_v13 = vpop.eup %2529 }
0x1de1   :  { %1115 = vrot.lane.b32.xlu1 %v2530_v13, %s2795_s1 }
0x1e53   :  { %v1116_v14 = vpop.permute.xlu1 %1115 }
0x1e54   :  { %v3239_v15 = vmul.f32 %v2528_v7, %v1116_v14 }
0x1e56   :  { %v1126_v16 = vpack.c.bf16 %v3239_v15, %v3239_v15 }
0x1e58   :  { %1128 = vrot.lane.b32.xlu0 %v1126_v16, %s2791_s30 }
0x1eca   :  { %v1129_v17 = vpop.permute.xlu0 %1128 }
0x1ecb   :  { %2311 = vmatmul.mubr.msk.bf16.vlgmr.msra.gmra.mrb[24].mxu0 %vm150_vm1, %v1129_v17 }
0x1ecc   :  { %2323 = vmatpush3.bf16.msra.mxu0 %v3177_v46  ;;  %2326 = vmatprep.mubr.msk.bf16.mxu0 %vm2800_vm0, %v2799_v0 }
0x1ecd   :  { %2324 = vmatprep.subr.bf16.mxu0 %v2799_v0 }
0x1ed0   :  { %2325 = vmatpush3.bf16.msra.mxu0 %v3180_v57 }
0x1ed1   :  { %2338 = vmatprep.subr.bf16.mxu0 %v2799_v0 }
0x1f9e   :  { %v1167_v19 = vpop.f32.mrb[24].mxu0 }
0x1f9f   :  { %v1173_v20 = vadd.f32 %v1167_v19, %v1125_v18  ;;  %v2312_v21 = vpop.f32.mrb[25].mxu0 }
0x1fa0   :  { %v1170_v22 = vpop.f32.mrb[26].mxu0 }
0x1fa1   :  { %2531 = vtanh.f32 %v1173_v20  ;;  %v2313_v23 = vpop.f32.mrb[27].mxu0  ;;  %v2109_v26 = vmul.f32 -1.442695, %v1173_v20  ;;  %v1362_v22 = vld [vmem:[#allocation3 + $0xc] sm:$0x3] }
0x1fa3   :  { %2533 = vpow2.f32 %v2109_v26 }
0x1fab   :  { %v2532_v24 = vpop.eup %2531 }
0x1fac   :  { %1183 = vrot.lane.b32.xlu1 %v2532_v24, %s2795_s1 }
0x1fad   :  { %v2534_v27 = vpop.eup %2533 }
0x1fae   :  { %v1177_v29 = vadd.f32 1.0, %v2534_v27 }
0x1fb0   :  { %2535 = vrcp.f32 %v1177_v29 }
0x1fba   :  { %v2536_v30 = vpop.eup %2535 }
0x1fbb   :  { %v1181_v33 = vmul.f32 %v2536_v30, %v1112_v12 }
0x201e   :  { %v1184_v31 = vpop.permute.xlu1 %1183 }
0x201f   :  { %v1186_v32 = vmul.f32 %v2536_v30, %v1184_v31 }
0x2021   :  { %1188 = vrot.lane.b32.xlu0 %v1186_v32, %s2791_s30 }
0x2093   :  { %v1189_v34 = vpop.permute.xlu0 %1188 }
0x2094   :  { %v1191_v36 = vadd.f32 %v1189_v34, %v1181_v33 }
0x2096   :  { %2537 = vtanh.f32 %v1191_v36 }
0x20a0   :  { %v2538_v37 = vpop.eup %2537 }
0x20a1   :  { %1194 = vrot.lane.b32.xlu1 %v2538_v37, %s2795_s1 }
0x2113   :  { %v1195_v38 = vpop.permute.xlu1 %1194 }
0x2114   :  { %v3254_v39 = vmul.f32 %v2536_v30, %v1195_v38 }
0x2116   :  { %v1205_v40 = vpack.c.bf16 %v3254_v39, %v3254_v39 }
0x2118   :  { %1207 = vrot.lane.b32.xlu0 %v1205_v40, %s2791_s30 }
0x218a   :  { %v1208_v41 = vpop.permute.xlu0 %1207 }
0x218b   :  { %2319 = vmatmul.mubr.msk.bf16.vlgmr.msra.gmra.mrb[24].mxu1 %vm150_vm1, %v1208_v41 }
0x218c   :  { %2331 = vmatpush3.bf16.msra.mxu1 %v3177_v46  ;;  %2334 = vmatprep.mubr.msk.bf16.mxu1 %vm2800_vm0, %v2799_v0 }
0x218d   :  { %2332 = vmatprep.subr.bf16.mxu1 %v2799_v0 }
0x2190   :  { %2333 = vmatpush3.bf16.msra.mxu1 %v3180_v57 }
0x2191   :  { %2346 = vmatprep.subr.bf16.mxu1 %v2799_v0 }
0x225e   :  { %v1246_v43 = vpop.f32.mrb[24].mxu1 }
0x225f   :  { %v1252_v44 = vadd.f32 %v1246_v43, %v1204_v42  ;;  %v2320_v45 = vpop.f32.mrb[25].mxu1 }
0x2260   :  { %v1249_v47 = vpop.f32.mrb[26].mxu1 }
0x2261   :  { %2539 = vtanh.f32 %v1252_v44  ;;  %v2321_v48 = vpop.f32.mrb[27].mxu1  ;;  %v2111_v51 = vmul.f32 -1.442695, %v1252_v44 }
0x2262   :  { %v1441_v48 = vld [vmem:[#allocation3 + $0xe] sm:$0x3] }
0x2263   :  { %2541 = vpow2.f32 %v2111_v51 }
0x226b   :  { %v2540_v49 = vpop.eup %2539 }
0x226c   :  { %1262 = vrot.lane.b32.xlu1 %v2540_v49, %s2795_s1 }
0x226d   :  { %v2542_v53 = vpop.eup %2541 }
0x226e   :  { %v1256_v54 = vadd.f32 1.0, %v2542_v53 }
0x2270   :  { %2543 = vrcp.f32 %v1256_v54 }
0x227a   :  { %v2544_v25 = vpop.eup %2543 }
0x227b   :  { %v1260_v55 = vmul.f32 %v2544_v25, %v1191_v36 }
0x22de   :  { %v1263_v6 = vpop.permute.xlu1 %1262 }
0x22df   :  { %v1265_v50 = vmul.f32 %v2544_v25, %v1263_v6 }
0x22e1   :  { %1267 = vrot.lane.b32.xlu0 %v1265_v50, %s2791_s30 }
0x2353   :  { %v1268_v28 = vpop.permute.xlu0 %1267 }
0x2354   :  { %v1270_v58 = vadd.f32 %v1268_v28, %v1260_v55 }
0x2356   :  { %2545 = vtanh.f32 %v1270_v58 }
0x2360   :  { %v2546_v1 = vpop.eup %2545 }
0x2361   :  { %1273 = vrot.lane.b32.xlu1 %v2546_v1, %s2795_s1 }
0x23d3   :  { %v1274_v59 = vpop.permute.xlu1 %1273 }
0x23d4   :  { %v3269_v60 = vmul.f32 %v2544_v25, %v1274_v59 }
0x23d6   :  { %v1284_v61 = vpack.c.bf16 %v3269_v60, %v3269_v60 }
0x23d8   :  { %1286 = vrot.lane.b32.xlu0 %v1284_v61, %s2791_s30 }
0x244a   :  { %v1287_v2 = vpop.permute.xlu0 %1286 }
0x244b   :  { %2327 = vmatmul.mubr.msk.bf16.vlgmr.msra.gmra.mrb[28].mxu0 %vm150_vm1, %v1287_v2 }
0x244c   :  { %2339 = vmatpush3.bf16.msra.mxu0 %v3177_v46  ;;  %2342 = vmatprep.mubr.msk.bf16.mxu0 %vm2800_vm0, %v2799_v0 }
0x244d   :  { %2340 = vmatprep.subr.bf16.mxu0 %v2799_v0 }
0x2450   :  { %2341 = vmatpush3.bf16.msra.mxu0 %v3180_v57 }
0x2451   :  { %2354 = vmatprep.subr.bf16.mxu0 %v2799_v0 }
0x251e   :  { %v1325_v63 = vpop.f32.mrb[28].mxu0 }
0x251f   :  { %v1331_v3 = vadd.f32 %v1325_v63, %v1283_v62  ;;  %v2328_v4 = vpop.f32.mrb[29].mxu0 }
0x2520   :  { %v1328_v5 = vpop.f32.mrb[30].mxu0 }
0x2521   :  { %2547 = vtanh.f32 %v1331_v3  ;;  %v2329_v7 = vpop.f32.mrb[31].mxu0  ;;  %v2113_v46 = vmul.f32 -1.442695, %v1331_v3  ;;  %v2436_v5 = vld [vmem:[#allocation15] sm:$0xff]  }
0x2522   :  { %v2437_v7 = vld [vmem:[%s3465_s9 + $0x8] sm:$0xff]  }
0x2523   :  { %2549 = vpow2.f32 %v2113_v46 }
0x252b   :  { %v2548_v8 = vpop.eup %2547 }
0x252c   :  { %1341 = vrot.lane.b32.xlu1 %v2548_v8, %s2795_s1  ;;  %v2438_v8 = vld [vmem:[#allocation15 + $0x8] sm:$0xff]  }
0x252d   :  { %v2550_v9 = vpop.eup %2549 }
0x252e   :  { %v1335_v10 = vadd.f32 1.0, %v2550_v9 }
0x2530   :  { %2551 = vrcp.f32 %v1335_v10 }
0x253a   :  { %v2552_v11 = vpop.eup %2551 }
0x253b   :  { %v1339_v13 = vmul.f32 %v2552_v11, %v1270_v58 }
0x259e   :  { %v1342_v12 = vpop.permute.xlu1 %1341 }
0x259f   :  { %v1344_v57 = vmul.f32 %v2552_v11, %v1342_v12 }
0x25a1   :  { %1346 = vrot.lane.b32.xlu0 %v1344_v57, %s2791_s30 }
0x2613   :  { %v1347_v14 = vpop.permute.xlu0 %1346 }
0x2614   :  { %v1349_v16 = vadd.f32 %v1347_v14, %v1339_v13  ;;  %v1668_v14 = vld [vmem:[#allocation14] sm:$0xf] }
0x2616   :  { %2553 = vtanh.f32 %v1349_v16 }
0x2620   :  { %v2554_v17 = vpop.eup %2553 }
0x2621   :  { %1352 = vrot.lane.b32.xlu1 %v2554_v17, %s2795_s1 }
0x2693   :  { %v1353_v18 = vpop.permute.xlu1 %1352 }
0x2694   :  { %v3284_v19 = vmul.f32 %v2552_v11, %v1353_v18 }
0x2696   :  { %v1363_v20 = vpack.c.bf16 %v3284_v19, %v3284_v19 }
0x2698   :  { %1365 = vrot.lane.b32.xlu0 %v1363_v20, %s2791_s30 }
0x270a   :  { %v1366_v21 = vpop.permute.xlu0 %1365 }
0x270b   :  { %2335 = vmatmul.mubr.msk.bf16.vlgmr.msra.gmra.mrb[28].mxu1 %vm150_vm1, %v1366_v21 }
0x270c   :  { %2350 = vmatprep.mubr.msk.bf16.mxu1 %vm2800_vm0, %v2799_v0 }
0x27de   :  { %v1404_v23 = vpop.f32.mrb[28].mxu1 }
0x27df   :  { %v1410_v24 = vadd.f32 %v1404_v23, %v1362_v22  ;;  %v2336_v26 = vpop.f32.mrb[29].mxu1 }
0x27e0   :  { %v1407_v27 = vpop.f32.mrb[30].mxu1 }
0x27e1   :  { %2555 = vtanh.f32 %v1410_v24  ;;  %v2337_v29 = vpop.f32.mrb[31].mxu1  ;;  %v2115_v31 = vmul.f32 -1.442695, %v1410_v24 }
0x27e2   :  { %v1719_v29 = vlaneseq }
0x27e3   :  { %2557 = vpow2.f32 %v2115_v31 }
0x27e4   :  { %v3356_v31 = vshrl.u32 %v1719_v29, 7 }
0x27eb   :  { %v2556_v30 = vpop.eup %2555 }
0x27ec   :  { %1420 = vrot.lane.b32.xlu1 %v2556_v30, %s2795_s1  ;;  %v1652_v30 = vld [vmem:[%s3464_s8] sm:$0x3]  ;;  %s2802_s8 = smov 96  }
0x27ed   :  { %v2558_v32 = vpop.eup %2557  ;;  %vm1717_vm4 = vcmp.gt.f32.partialorder %v1652_v30, 0.5 }
0x27ee   :  { %v1414_v33 = vadd.f32 1.0, %v2558_v32  ;;  %v1721_v32 = vsub.s32 0, %v3356_v31 }
0x27f0   :  { %2559 = vrcp.f32 %v1414_v33  ;;  %v2801_v33 = vmov 0  }
0x27fa   :  { %v2560_v34 = vpop.eup %2559 }
0x27fb   :  { %v1418_v38 = vmul.f32 %v2560_v34, %v1349_v16  ;;  %v1675_v16 = vsel %vm1590_vm3, %v1668_v14, 0 }
0x285e   :  { %v1421_v36 = vpop.permute.xlu1 %1420 }
0x285f   :  { %v1423_v37 = vmul.f32 %v2560_v34, %v1421_v36 }
0x2861   :  { %1425 = vrot.lane.b32.xlu0 %v1423_v37, %s2791_s30 }
0x28d3   :  { %v1426_v40 = vpop.permute.xlu0 %1425 }
0x28d4   :  { %v1428_v41 = vadd.f32 %v1426_v40, %v1418_v38 }
0x28d6   :  { %2561 = vtanh.f32 %v1428_v41 }
0x28e0   :  { %v2562_v42 = vpop.eup %2561 }
0x28e1   :  { %1431 = vrot.lane.b32.xlu1 %v2562_v42, %s2795_s1 }
0x2953   :  { %v1432_v43 = vpop.permute.xlu1 %1431 }
0x2954   :  { %v1434_v44 = vmul.f32 %v2560_v34, %v1432_v43  ;;  %v1718_v34 = vsel %vm1717_vm4, 1, %v2801_v33 }
0x2955   :  { %v1722_v36 = vrot.slane %v1718_v34, %v1721_v32 }
0x2956   :  { %v1442_v45 = vpack.c.bf16 %v1434_v44, %v1434_v44 }
0x2957   :  { %vm1723_vm5 = vcmp.eq.s32.totalorder %v1722_v36, 1 }
0x2958   :  { %1444 = vrot.lane.b32.xlu0 %v1442_v45, %s2791_s30 }
0x29ca   :  { %v1445_v47 = vpop.permute.xlu0 %1444 }
0x29cb   :  { %2343 = vmatmul.mubr.msk.bf16.vlgmr.msra.gmra.mrb[32].mxu0 %vm150_vm1, %v1445_v47 }
0x29cc   :  { %2358 = vmatprep.mubr.msk.bf16.mxu0 %vm2800_vm0, %v2799_v0  ;;  %2355 = vmatpush3.bf16.msra.mxu0 %v2436_v5 }
0x29cd   :  { %2356 = vmatprep.subr.bf16.mxu0 %v2799_v0 }
0x29d0   :  { %2357 = vmatpush3.bf16.msra.mxu0 %v2438_v8 }
0x29d1   :  { %2368 = vmatprep.subr.bf16.mxu0 %v2799_v0 }
0x2a9e   :  { %v1483_v49 = vpop.f32.mrb[32].mxu0 }
0x2a9f   :  { %v1489_v51 = vadd.f32 %v1483_v49, %v1441_v48  ;;  %v2344_v53 = vpop.f32.mrb[33].mxu0 }
0x2aa0   :  { %v1486_v54 = vpop.f32.mrb[34].mxu0  ;;  %v2439_v53 = vld [vmem:[%s3467_s11] sm:$0xff]  }
0x2aa1   :  { %2563 = vtanh.f32 %v1489_v51  ;;  %v2345_v25 = vpop.f32.mrb[35].mxu0  ;;  %v2117_v50 = vmul.f32 -1.442695, %v1489_v51  ;;  %v1742_v51 = vsel %vm1741_vm7, %v1668_v14, 0  ;;  %v2440_v54 = vld [vmem:[%s3467_s11 + $0x8] sm:$0xff]  }
0x2aa3   :  { %2565 = vpow2.f32 %v2117_v50 }
0x2aab   :  { %v2564_v6 = vpop.eup %2563 }
0x2aac   :  { %1499 = vrot.lane.b32.xlu1 %v2564_v6, %s2795_s1 }
0x2aad   :  { %v2566_v55 = vpop.eup %2565 }
0x2aae   :  { %v1493_v28 = vadd.f32 1.0, %v2566_v55  ;;  %v1857_v55 = vld [vmem:[#allocation14 + $0x4] sm:$0xf] }
0x2aaf   :  { %v1928_v14 = vsel %vm1741_vm7, %v1857_v55, 0 }
0x2ab0   :  { %2567 = vrcp.f32 %v1493_v28 }
0x2aba   :  { %v2568_v58 = vpop.eup %2567 }
0x2abb   :  { %v1497_v61 = vmul.f32 %v2568_v58, %v1428_v41 }
0x2b1e   :  { %v1500_v1 = vpop.permute.xlu1 %1499 }
0x2b1f   :  { %v1502_v59 = vmul.f32 %v2568_v58, %v1500_v1  ;;  %v1865_v1 = vsel %vm1590_vm3, %v1857_v55, 0 }
0x2b21   :  { %1504 = vrot.lane.b32.xlu0 %v1502_v59, %s2791_s30 }
0x2b25   :  { %962 = vrot.lane.b32.xlu0 %v3209_v35, %s2791_s30 }
0x2b29   :  { %1120 = vrot.lane.b32.xlu0 %v3239_v15, %s2791_s30 }
0x2b2d   :  { %1278 = vrot.lane.b32.xlu0 %v3269_v60, %s2791_s30  ;;  %v2435_v60 = vld [vmem:[%s3465_s9] sm:$0xff]  }
0x2b2e   :  { %2347 = vmatpush3.bf16.msra.mxu1 %v2435_v60 }
0x2b2f   :  { %2348 = vmatprep.subr.bf16.mxu1 %v2799_v0 }
0x2b31   :  { %1436 = vrot.lane.b32.xlu0 %v1434_v44, %s2791_s30 }
0x2b32   :  { %2349 = vmatpush3.bf16.msra.mxu1 %v2437_v7 }
0x2b33   :  { %2362 = vmatprep.subr.bf16.mxu1 %v2799_v0 }
0x2b93   :  { %v1505_v2 = vpop.permute.xlu0 %1504 }
0x2b94   :  { %v3308_v62 = vadd.f32 %v1505_v2, %v1497_v61  ;;  %v2442_v2 = vld [vmem:[%s3467_s11 + $0x18] sm:$0xff]  }
0x2b96   :  { %2569 = vtanh.f32 %v3308_v62 }
0x2b97   :  { %v963_v63 = vpop.permute.xlu0 %962 }
0x2b98   :  { %965 = vst.msk [vmem:[#allocation2] sm:$0x3] %vm227_vm2, %v963_v63  ;;  %v1909_v63 = vsub.s32 1, %v3356_v31 }
0x2b9a   :  { %v1910_v60 = vrot.slane %v1718_v34, %v1909_v63 }
0x2b9b   :  { %v1121_v3 = vpop.permute.xlu0 %1120 }
0x2b9c   :  { %1123 = vst.msk [vmem:[#allocation2 + $0x4] sm:$0x3] %vm227_vm2, %v1121_v3  ;;  %vm1911_vm8 = vcmp.eq.s32.totalorder %v1910_v60, 1 }
0x2b9f   :  { %v1279_v35 = vpop.permute.xlu0 %1278 }
0x2ba0   :  { %v2570_v4 = vpop.eup %2569  ;;  %1281 = vst.msk [vmem:[#allocation2 + $0x8] sm:$0x3] %vm227_vm2, %v1279_v35 }
0x2ba1   :  { %1510 = vrot.lane.b32.xlu1 %v2570_v4, %s2795_s1 }
0x2ba3   :  { %v1437_v15 = vpop.permute.xlu0 %1436 }
0x2ba4   :  { %1439 = vst.msk [vmem:[#allocation2 + $0xc] sm:$0x3] %vm227_vm2, %v1437_v15 }
0x2ba5   :  { %1041 = vrot.lane.b32.xlu1 %v3224_v56, %s2791_s30 }
0x2ba9   :  { %1199 = vrot.lane.b32.xlu1 %v3254_v39, %s2791_s30 }
0x2bad   :  { %1357 = vrot.lane.b32.xlu1 %v3284_v19, %s2791_s30 }
0x2c13   :  { %v1511_v56 = vpop.permute.xlu1 %1510 }
0x2c14   :  { %v1513_v39 = vmul.f32 %v2568_v58, %v1511_v56 }
0x2c16   :  { %1515 = vrot.lane.b32.xlu1 %v1513_v39, %s2791_s30 }
0x2c17   :  { %v1042_v46 = vpop.permute.xlu1 %1041 }
0x2c18   :  { %1044 = vst.msk [vmem:[#allocation2 + $0x2] sm:$0x3] %vm227_vm2, %v1042_v46 }
0x2c1b   :  { %v1200_v9 = vpop.permute.xlu1 %1199 }
0x2c1c   :  { %1202 = vst.msk [vmem:[#allocation2 + $0x6] sm:$0x3] %vm227_vm2, %v1200_v9 }
0x2c1f   :  { %v1358_v10 = vpop.permute.xlu1 %1357 }
0x2c20   :  { %1360 = vst.msk [vmem:[#allocation2 + $0xa] sm:$0x3] %vm227_vm2, %v1358_v10 }
0x2c23   :  { %v1527_v12 = vld [vmem:[#allocation2] sm:$0xff] }
0x2c88   :  { %v1516_v11 = vpop.permute.xlu1 %1515 }
0x2c89   :  { %1518 = vst.msk [vmem:[#allocation2 + $0xe] sm:$0x3] %vm227_vm2, %v1516_v11  ;;  %1520 = vst.msk [vmem:[#allocation18 + $0x2] sm:$0x3] %vm227_vm2, %v1516_v11 }
0x2c90   :  { %v1528_v57 = vld [vmem:[#allocation2 + $0x8] sm:$0xff] }
0x2c91   :  { %v1529_v13 = vpack.c.bf16 %v1528_v57, %v1527_v12 }
0x2c93   :  { %2351 = vmatmul.mubr.msk.bf16.vlgmr.msra.gmra.mrb[32].mxu1 %vm150_vm1, %v1529_v13  ;;  %2359 = vmatmul.mubr.msk.bf16.vlgmr.msra.gmra.mrb[36].mxu0 %vm150_vm1, %v1529_v13 }
0x2c94   :  { %2364 = vmatprep.mubr.msk.bf16.mxu1 %vm2800_vm0, %v2799_v0  ;;  %2370 = vmatprep.mubr.msk.bf16.mxu0 %vm2800_vm0, %v2799_v0 }
0x2c95   :  { %2363 = vmatpush3.bf16.xpose.msra.mxu1 %v1675_v16  ;;  %2369 = vmatpush3.bf16.msra.mxu0 %v1742_v51  ;;  %v3405_v16 = vld [vmem:[%s3468_s12] ss:$0 sm:$0xff]  ;;  %s2803_s12 = smov [#allocation18]  }
0x2c96   :  { %2374 = vmatprep.subr.bf16.mxu1 %v2799_v0  ;;  %2386 = vmatprep.subr.bf16.mxu0 %v2799_v0  ;;  %s2037_s25 = sshll.u32 %s2803_s12, 4  ;;  %s2038_s25 = int_to_ptr.vmem [resolvable:$true] %s2037_s25 }
0x2c97   :  { %s2711_s7 = scalar_lea.vmem %s2038_s25, 64  ;;  %p2716_p7 = scmp.lt.s32.totalorder %s2038_s25, %s2038_s25 }
0x2c98   :  { %p2712_p6 = scmp.ne.s32.totalorder %s2038_s25, %s2711_s7  ;;  %p2717_p8 = scmp.lt.s32.totalorder %s2711_s7, %s2711_s7 }
0x2c9a   :  { %p2718_p9 = por %p2717_p8, %p2716_p7 }
0x2c9c   :  { %p2719_p10 = pnand %p2718_p9, %p2712_p6 }
0x2d66   :  { %v1583_v17 = vpop.f32.mrb[32].mxu1  ;;  %v1643_v18 = vpop.f32.mrb[36].mxu0 }
0x2d67   :  { %1591 = vst.msk [vmem:[#allocation4] sm:$0xff] %vm1590_vm3, %v1583_v17  ;;  %v2352_v19 = vpop.f32.mrb[33].mxu1  ;;  %v2360_v20 = vpop.f32.mrb[37].mxu0 }
0x2d68   :  { %1650 = vst.msk [vmem:[#allocation5] sm:$0xff] %vm150_vm1, %v1643_v18  ;;  %v1586_v21 = vpop.f32.mrb[34].mxu1  ;;  %v1646_v22 = vpop.f32.mrb[38].mxu0 }
0x2d69   :  { %1592 = vst.msk [vmem:[#allocation4 + $0x8] sm:$0xff] %vm1590_vm3, %v1586_v21  ;;  %v2353_v23 = vpop.f32.mrb[35].mxu1  ;;  %v2361_v24 = vpop.f32.mrb[39].mxu0 }
0x2d6a   :  { %1651 = vst.msk [vmem:[#allocation5 + $0x8] sm:$0xff] %vm150_vm1, %v1646_v22 }
0x2d70   :  { %v1669_v26 = vld [vmem:[#allocation4] ss:$2 sm:$0xff]  ;;  %v1859_v59 = vld [vmem:[#allocation4 + $0x1] ss:$2 sm:$0xff] }
0x2d71   :  { %v1670_v27 = vpack.c.bf16 %v1669_v26, %v1669_v26  ;;  %v1860_v61 = vpack.c.bf16 %v1859_v59, %v1859_v59 }
0x2d73   :  { %2365 = vmatmul.mubr.msk.bf16.vlgmr.msra.gmra.mrb[36].mxu1 %vm1590_vm3, %v1670_v27 }
0x2d74   :  { %2382 = vmatprep.mubr.msk.bf16.mxu1 %vm2800_vm0, %v2799_v0  ;;  %2375 = vmatpush3.bf16.msra.mxu1 %v2439_v53 }
0x2d75   :  { %2376 = vmatprep.subr.bf16.mxu1 %v2799_v0 }
0x2d78   :  { %2377 = vmatpush3.bf16.msra.mxu1 %v2440_v54 }
0x2d79   :  { %2378 = vmatprep.subr.bf16.mxu1 %v2799_v0 }
0x2e46   :  { %v1711_v37 = vpop.f32.mrb[36].mxu1 }
0x2e47   :  { %v1724_v38 = vsel %vm1723_vm5, %v1711_v37, -1e+09  ;;  %v2366_v40 = vpop.f32.mrb[37].mxu1 }
0x2e48   :  { %v1714_v41 = vpop.f32.mrb[38].mxu1  ;;  %v1726_v42 = vsel %vm1725_vm6, %v1724_v38, -inf }
0x2e49   :  { %1727 = vmax.xlane.f32.xlu0 %v1726_v42  ;;  %v2367_v43 = vpop.f32.mrb[39].mxu1 }
0x2ed6   :  { %v1728_v44 = vpop.xlane.xlu0 %1727 }
0x2ed7   :  { %v1729_v45 = vsub.f32 %v1724_v38, %v1728_v44 }
0x2ed9   :  { %v1730_v47 = vmul.f32 1.442695, %v1729_v45 }
0x2edb   :  { %2571 = vpow2.f32 %v1730_v47 }
0x2ee5   :  { %v2572_v48 = vpop.eup %2571 }
0x2ee6   :  { %v1732_v49 = vsel %vm1725_vm6, %v2572_v48, 0.0 }
0x2ee7   :  { %1733 = vadd.xlane.f32.xlu1 %v1732_v49 }
0x2ef8   :  { %791 = vrot.lane.b32.xlu1 %v3155_v52, %s2802_s8  ;;  %v2441_v52 = vld [vmem:[%s3467_s11 + $0x10] sm:$0xff]  }
0x2ef9   :  { %2379 = vmatpush3.bf16.msra.mxu1 %v2441_v52 }
0x2efa   :  { %2380 = vmatprep.subr.bf16.mxu1 %v2799_v0 }
0x2efd   :  { %2381 = vmatpush3.bf16.msra.mxu1 %v2442_v2 }
0x2efe   :  { %2398 = vmatprep.subr.bf16.mxu1 %v2799_v0 }
0x2f74   :  { %v1734_v25 = vpop.xlane.xlu1 %1733 }
0x2f75   :  { %2573 = vrcp.f32 %v1734_v25 }
0x2f78   :  { %v792_v6 = vpop.permute.xlu1 %791 }
0x2f79   :  { %794 = vst.msk [vmem:[#allocation20] sm:$0x3] %vm227_vm2, %v792_v6 }
0x2f7f   :  { %v2574_v50 = vpop.eup %2573 }
0x2f80   :  { %v1736_v28 = vmul.f32 %v2574_v50, %v2572_v48 }
0x2f82   :  { %v1737_v58 = vpack.c.bf16 %v1736_v28, %v1736_v28 }
0x2f84   :  { %2371 = vmatmul.mubr.msk.bf16.vlgmr.msra.gmra.mrb[40].mxu0 %vm1725_vm6, %v1737_v58 }
0x2f85   :  { %2387 = vmatpush3.bf16.xpose.msra.mxu0 %v1865_v1  ;;  %2388 = vmatprep.mubr.msk.bf16.mxu0 %vm2800_vm0, %v2799_v0 }
0x2f86   :  { %2392 = vmatprep.subr.bf16.mxu0 %v2799_v0 }
0x2f8c   :  { %2389 = vmatmul.mubr.msk.bf16.vlgmr.msra.gmra.mrb[44].mxu0 %vm1590_vm3, %v1860_v61 }
0x2f8d   :  { %2394 = vmatprep.mubr.msk.bf16.mxu0 %vm2800_vm0, %v2799_v0  ;;  %2393 = vmatpush3.bf16.msra.mxu0 %v1928_v14 }
0x3057   :  { %v1778_v3 = vpop.f32.mrb[40].mxu0 }
0x3058   :  { %v1785_v35 = vpack.c.bf16 %v1778_v3, %v1778_v3  ;;  %v2372_v4 = vpop.f32.mrb[41].mxu0 }
0x3059   :  { %v1781_v15 = vpop.f32.mrb[42].mxu0 }
0x305a   :  { %v2373_v5 = vpop.f32.mrb[43].mxu0  ;;  %2383 = vmatmul.mubr.msk.bf16.vlgmr.msra.gmra.mrb[40].mxu1 %vm1590_vm3, %v1785_v35 }
0x305b   :  { %2399 = vmatpush3.bf16.msra.mxu1 %v2439_v53  ;;  %2406 = vmatprep.mubr.msk.bf16.mxu1 %vm2800_vm0, %v2799_v0 }
0x305c   :  { %2400 = vmatprep.subr.bf16.mxu1 %v2799_v0 }
0x305f   :  { %v1901_v7 = vpop.f32.mrb[44].mxu0  ;;  %2401 = vmatpush3.bf16.msra.mxu1 %v2440_v54 }
0x3060   :  { %v1912_v8 = vsel %vm1911_vm8, %v1901_v7, -1e+09  ;;  %v2390_v56 = vpop.f32.mrb[45].mxu0  ;;  %2402 = vmatprep.subr.bf16.mxu1 %v2799_v0 }
0x3061   :  { %v1904_v39 = vpop.f32.mrb[46].mxu0  ;;  %v1913_v46 = vsel %vm1725_vm6, %v1912_v8, -inf }
0x3062   :  { %1914 = vmax.xlane.f32.xlu0 %v1913_v46  ;;  %v2391_v9 = vpop.f32.mrb[47].mxu0 }
0x3063   :  { %2403 = vmatpush3.bf16.msra.mxu1 %v2441_v52 }
0x3064   :  { %2404 = vmatprep.subr.bf16.mxu1 %v2799_v0  ;;  %v1784_v0 = vld [vmem:[#allocation5] ss:$2 sm:$0xff] }
0x3067   :  { %2405 = vmatpush3.bf16.msra.mxu1 %v2442_v2 }
0x30ef   :  { %v1915_v10 = vpop.xlane.xlu0 %1914 }
0x30f0   :  { %v1916_v11 = vsub.f32 %v1912_v8, %v1915_v10 }
0x30f2   :  { %v1917_v12 = vmul.f32 1.442695, %v1916_v11 }
0x30f4   :  { %2575 = vpow2.f32 %v1917_v12 }
0x30fe   :  { %v2576_v57 = vpop.eup %2575 }
0x30ff   :  { %v1919_v13 = vsel %vm1725_vm6, %v2576_v57, 0.0 }
0x3100   :  { %1920 = vadd.xlane.f32.xlu0 %v1919_v13 }
0x3116   :  { %1522 = vrot.lane.b32.xlu0 %v3308_v62, %s2802_s8 }
0x312d   :  { %v1847_v17 = vpop.f32.mrb[40].mxu1 }
0x312e   :  { %v1853_v18 = vadd.f32 %v1847_v17, %v1784_v0  ;;  %v2384_v19 = vpop.f32.mrb[41].mxu1 }
0x312f   :  { %v1850_v20 = vpop.f32.mrb[42].mxu1 }
0x3130   :  { %v1854_v21 = vadd.f32 %v3405_v16, %v1853_v18  ;;  %v2385_v22 = vpop.f32.mrb[43].mxu1 }
0x3132   :  { %1855 = vst.msk [vmem:[#allocation17] sm:$0xff] %vm150_vm1, %v1854_v21 }
0x318d   :  { %v1921_v23 = vpop.xlane.xlu0 %1920 }
0x318e   :  { %2577 = vrcp.f32 %v1921_v23 }
0x3191   :  { %v1523_v62 = vpop.permute.xlu0 %1522 }
0x3192   :  { %1526 = vst.msk [vmem:[#allocation20 + $0x2] sm:$0x3] %vm227_vm2, %v1523_v62 }
0x3198   :  { %v2578_v24 = vpop.eup %2577 }
0x3199   :  { %v1923_v26 = vmul.f32 %v2578_v24, %v2576_v57 }
0x319b   :  { %v1924_v27 = vpack.c.bf16 %v1923_v26, %v1923_v26 }
0x319d   :  { %2395 = vmatmul.mubr.msk.bf16.vlgmr.msra.gmra.mrb[48].mxu0 %vm1725_vm6, %v1924_v27 }
0x3270   :  { %v1964_v29 = vpop.f32.mrb[48].mxu0 }
0x3271   :  { %v1972_v30 = vpack.c.bf16 %v1964_v29, %v1964_v29  ;;  %v2396_v31 = vpop.f32.mrb[49].mxu0 }
0x3272   :  { %v1967_v32 = vpop.f32.mrb[50].mxu0 }
0x3273   :  { %v2397_v33 = vpop.f32.mrb[51].mxu0  ;;  %2407 = vmatmul.mubr.msk.bf16.vlgmr.msra.gmra.mrb[44].mxu1 %vm1590_vm3, %v1972_v30 }
0x3274   :  { %2722 = shalt.err (!%p2719_p10)
}
0x3275   :  { %s2723_s0 = scalar_lea.hbm %s3470_s14, 64 }
0x3276   :  { %p2724_p11 = scmp.ne.s32.totalorder %s3470_s14, %s2723_s0  ;;  %p2727_p12 = scmp.lt.u32.totalorder %s2723_s0, %s3470_s14 }
0x3278   :  { %p2729_p13 = pnand %p2727_p12, %p2724_p11 }
0x327a   :  { %2732 = shalt.err (!%p2729_p13)
}
0x327b   :  { %2043 = dma.vmem_to_hbm [thread:$0]  %s2038_s25, 64, %s3470_s14, [#allocation19], %s2791_s30, %s2791_s30, %s2792_s16  }
0x327c   :  { %s2804_s27 = smov [#allocation20]  }
0x327d   :  { %s2049_s9 = sshll.u32 %s2804_s27, 4  ;;  %s2050_s9 = int_to_ptr.vmem [resolvable:$true] %s2049_s9 }
0x327e   :  { %s2733_s5 = scalar_lea.vmem %s2050_s9, 64  ;;  %p2738_p1 = scmp.lt.s32.totalorder %s2050_s9, %s2050_s9 }
0x327f   :  { %p2734_p0 = scmp.ne.s32.totalorder %s2050_s9, %s2733_s5  ;;  %p2739_p2 = scmp.lt.s32.totalorder %s2733_s5, %s2733_s5 }
0x3281   :  { %p2740_p3 = por %p2739_p2, %p2738_p1 }
0x3283   :  { %p2741_p4 = pnand %p2740_p3, %p2734_p0 }
0x3285   :  { %2744 = shalt.err (!%p2741_p4)
}
0x3286   :  { %s2745_s28 = scalar_lea.hbm %s3471_s15, 64 }
0x3287   :  { %p2746_p5 = scmp.ne.s32.totalorder %s3471_s15, %s2745_s28  ;;  %p2749_p6 = scmp.lt.u32.totalorder %s2745_s28, %s3471_s15 }
0x3289   :  { %p2751_p7 = pnand %p2749_p6, %p2746_p5 }
0x328b   :  { %2754 = shalt.err (!%p2751_p7)
}
0x328c   :  { %2055 = dma.vmem_to_hbm [thread:$0]  %s2050_s9, 64, %s3471_s15, [#allocation19], %s2791_s30, %s2791_s30, %s2792_s16   ;;  %v1971_v34 = vld [vmem:[#allocation5 + $0x1] ss:$2 sm:$0xff] }
0x328d   :  { %s2805_s23 = smov [#allocation17]  }
0x328e   :  { %s2025_s11 = sshll.u32 %s2805_s23, 4  ;;  %s2026_s11 = int_to_ptr.vmem [resolvable:$true] %s2025_s11 }
0x328f   :  { %s2755_s24 = scalar_lea.vmem %s2026_s11, 256  ;;  %p2760_p9 = scmp.lt.s32.totalorder %s2026_s11, %s2026_s11 }
0x3290   :  { %p2756_p8 = scmp.ne.s32.totalorder %s2026_s11, %s2755_s24  ;;  %p2761_p10 = scmp.lt.s32.totalorder %s2755_s24, %s2755_s24 }
0x3292   :  { %p2762_p11 = por %p2761_p10, %p2760_p9 }
0x3294   :  { %p2763_p12 = pnand %p2762_p11, %p2756_p8 }
0x3346   :  { %v2010_v36 = vpop.f32.mrb[44].mxu1 }
0x3347   :  { %v2016_v37 = vadd.f32 %v2010_v36, %v1971_v34  ;;  %v2408_v38 = vpop.f32.mrb[45].mxu1 }
0x3348   :  { %v2013_v40 = vpop.f32.mrb[46].mxu1 }
0x3349   :  { %v2017_v41 = vadd.f32 %v3405_v16, %v2016_v37  ;;  %v2409_v42 = vpop.f32.mrb[47].mxu1 }
0x334b   :  { %2019 = vst.msk [vmem:[#allocation17 + $0x8] sm:$0xff] %vm150_vm1, %v2017_v41 }
0x334c   :  { %2766 = shalt.err (!%p2763_p12)
}
0x334d   :  { %s2767_s16 = scalar_lea.hbm %s3469_s13, 256 }
0x334e   :  { %p2768_p13 = scmp.ne.s32.totalorder %s3469_s13, %s2767_s16  ;;  %p2771_p0 = scmp.lt.u32.totalorder %s2767_s16, %s3469_s13 }
0x3350   :  { %p2773_p1 = pnand %p2771_p0, %p2768_p13 }
0x3352   :  { %2776 = shalt.err (!%p2773_p1)
}
0x3353   :  { %s2806_s10 = smov 128   ;;  %s2807_s0 = smov 8  }
0x3354   :  { %2031 = dma.vmem_to_hbm [thread:$0]  %s2026_s11, 256, %s3469_s13, [#allocation8], %s2806_s10, %s2806_s10, %s2807_s0  }
0x3355   :  { %2785 = dma.done.wait [#allocation8], 256  }
0x3356   :  { %2786 = vsyncadd [#allocation8], 4294967040 }
0x3357   :  { %2787 = dma.done.wait [#allocation19], 128  }
0x3358   :  { %2788 = vsyncadd [#allocation19], 4294967168 }
0x3359   :  { %2065 = vsyncpa [#allocation7], 1 }
0x335a   :  { %2066 = vsyncpa [#allocation10], 1 }
0x335b   :  { %2067 = vsyncpa [#allocation13], 1 }
0x335c   :  { %2068 = vsyncpa [#allocation16], 1 }
0x335d   :  { %2069 = vsyncpa [#allocation8], 1 }
0x335e   :  { %2070 = vsyncpa [#allocation19], 1 }

</bundles_post_ra>
